<compile_context>
chip_gen: v7x
topology: tpu7x:2x2x1
jax: 0.10.0
libtpu: 0.0.40
codegen_flags: <defaults>
</compile_context>

<pallas_src>
import numpy as np
import jax
import jax.numpy as jnp
from jax import lax
from jax.experimental import pallas as pl
from jax.experimental.pallas import tpu as pltpu

DILATIONS = (1, 3, 6, 9)
NB = len(DILATIONS)
BN_EPS = 1e-8          # module spec: nn.BatchNorm2d(..., eps=1e-08)


# ----------------------------------------------------------------------------
# Host-side: 0/1 boundary masks, one row per (branch, tap), flattened spatial.
# mask[bi*9 + kh*3 + kw, h*W + w] = 1  iff  (h+(kh-1)d, w+(kw-1)d) is in-bounds.
# ----------------------------------------------------------------------------
def build_tap_masks(H, W):
    HW = H * W
    hh, ww = np.meshgrid(np.arange(H), np.arange(W), indexing="ij")
    hh, ww = hh.reshape(-1), ww.reshape(-1)
    masks = np.zeros((NB * 9, HW), np.float32)
    for bi, d in enumerate(DILATIONS):
        for kh in range(3):
            for kw in range(3):
                dh, dw = (kh - 1) * d, (kw - 1) * d
                ok = (hh + dh >= 0) & (hh + dh < H) & (ww + dw >= 0) & (ww + dw < W)
                masks[bi * 9 + kh * 3 + kw] = ok.astype(np.float32)
    return jnp.asarray(masks)


# ----------------------------------------------------------------------------
# Pallas kernel: one grid step = one batch element, full spatial tile in VMEM.
# Everything is channels-first with H*W lane-dense.
# ----------------------------------------------------------------------------
def _make_kernel(H, W):
    HW = H * W

    def kernel(x_ref, w1_ref, b1_ref, dww_ref, b2_ref, wout_ref, b3_ref,
               masks_ref, o_ref):
        x = x_ref[0]                                         # (Cin, HW)

        # --- conv1 (1x1, BN1 folded) + ReLU6 on the MXU ----------------------
        y = jnp.dot(w1_ref[...], x, preferred_element_type=jnp.float32)
        y = jnp.clip(y + b1_ref[...], 0.0, 6.0)              # (hid, HW)

        dww = dww_ref[...]                                   # (hid, 4*9) BN2-scaled taps
        b2 = b2_ref[...]                                     # (hid, 4)   dw bias + BN2 shift

        # --- 4 depthwise branches: roll (XLU) + mask + MAC (VPU) --------------
        branches = []
        for bi, d in enumerate(DILATIONS):
            # center tap initializes the accumulator (no roll, no mask, no add)
            ctr = bi * 9 + 4
            acc = y * dww[:, ctr:ctr + 1]
            for kh in range(3):
                dh = (kh - 1) * d
                for kw in range(3):
                    if kh == 1 and kw == 1:
                        continue
                    dw = (kw - 1) * d
                    col = bi * 9 + kh * 3 + kw
                    off = dh * W + dw                        # flat spatial offset
                    tap = pltpu.roll(y, (-off) % HW, axis=1)   # lane rotate on XLU
                    m = masks_ref[pl.ds(col, 1), :]          # (1, HW) 0/1 boundary mask
                    acc = acc + (tap * m) * dww[:, col:col + 1]
            branches.append(jnp.clip(acc + b2[:, bi:bi + 1], 0.0, 6.0))

        # --- fused output 1x1: ONE (oup, 4*hid) x (4*hid, HW) matmul ----------
        stacked = jnp.concatenate(branches, axis=0)          # (4*hid, HW)
        z = jnp.dot(wout_ref[...], stacked, preferred_element_type=jnp.float32)

        # --- BN3 shift + ReLU6 + residual (down=False => oup == inp) ----------
        z = jnp.clip(z + b3_ref[...], 0.0, 6.0)
        o_ref[0] = (z + x).astype(o_ref.dtype)

    return kernel


# ----------------------------------------------------------------------------
# Wrapper: NCHW in / NCHW out, no host-side transposes.
# ----------------------------------------------------------------------------
def multidilation_forward(x_nchw, kp):
    N, Cin, H, W = x_nchw.shape
    oup = kp["wout"].shape[0]
    assert oup == Cin, "down=False residual requires oup == inp"
    HW = H * W

    x = x_nchw.reshape(N, Cin, HW).astype(jnp.float32)
    masks = build_tap_masks(H, W)
    args = (x, kp["w1"], kp["b1"], kp["dww"], kp["b2"], kp["wout"], kp["b3"], masks)

    def full_spec(a):
        nd = a.ndim
        return pl.BlockSpec(a.shape, lambda n, _nd=nd: (0,) * _nd)

    in_specs = [pl.BlockSpec((1, Cin, HW), lambda n: (n, 0, 0))]
    in_specs += [full_spec(a) for a in args[1:]]            # weights/masks: resident

    out = pl.pallas_call(
        _make_kernel(H, W),
        out_shape=jax.ShapeDtypeStruct((N, oup, HW), jnp.float32),
        grid_spec=pltpu.PrefetchScalarGridSpec(
            num_scalar_prefetch=0,
            grid=(N,),
            in_specs=in_specs,
            out_specs=pl.BlockSpec((1, oup, HW), lambda n: (n, 0, 0)),
        ),
        compiler_params=pltpu.CompilerParams(
            dimension_semantics=("parallel",),
            vmem_limit_bytes=32 * 1024 * 1024),
    )(*args)
    return out.reshape(N, oup, H, W)


# ----------------------------------------------------------------------------
# Raw parameters (mirrors _initialize_weights; eval-mode BN running stats).
# ----------------------------------------------------------------------------
def init_raw_params(key, inp, oup, shrink_rate=2):
    hid = inp // shrink_rate
    ks = jax.random.split(key, 6)
    p = {}
    p["w1"] = jax.random.normal(ks[0], (hid, inp), jnp.float32) * (2.0 / inp) ** 0.5
    p["b1"] = jnp.zeros((hid,), jnp.float32)
    p["dww"] = jax.random.normal(ks[1], (NB, 3, 3, hid), jnp.float32) * (2.0 / 9.0) ** 0.5
    p["dwb"] = jnp.zeros((NB, hid), jnp.float32)
    p["wout"] = jax.random.normal(ks[2], (oup, NB * hid), jnp.float32) * (2.0 / (NB * hid)) ** 0.5
    for name, n, k in (("1", hid, ks[3]), ("2", NB * hid, ks[4]), ("3", oup, ks[5])):
        p["g" + name] = 1.0 + 0.02 * jax.random.normal(k, (n,), jnp.float32)
        p["beta" + name] = jnp.zeros((n,), jnp.float32)
        p["m" + name] = jnp.zeros((n,), jnp.float32)
        p["v" + name] = jnp.ones((n,), jnp.float32)
    return p


# Fold eval-mode BatchNorms (+ depthwise biases) into conv weights/biases and
# lay the parameters out exactly the way the kernel consumes them.
def fold_params(p):
    hid = p["w1"].shape[0]
    oup = p["wout"].shape[0]

    def bn_affine(g, beta, m, v):
        s = g / jnp.sqrt(v + BN_EPS)
        return s, beta - m * s

    s1, t1 = bn_affine(p["g1"], p["beta1"], p["m1"], p["v1"])
    s2, t2 = bn_affine(p["g2"], p["beta2"], p["m2"], p["v2"])
    s3, t3 = bn_affine(p["g3"], p["beta3"], p["m3"], p["v3"])
    s2r, t2r = s2.reshape(NB, hid), t2.reshape(NB, hid)

    dww = p["dww"] * s2r[:, None, None, :]                          # (4,3,3,hid)
    dww = jnp.transpose(dww, (3, 0, 1, 2)).reshape(hid, NB * 9)     # col = bi*9+kh*3+kw

    return dict(
        w1=p["w1"] * s1[:, None],                                   # (hid, inp)
        b1=(s1 * p["b1"] + t1).reshape(hid, 1),                     # (hid, 1)
        dww=dww,                                                    # (hid, 36)
        b2=jnp.transpose(s2r * p["dwb"] + t2r),                     # (hid, 4)
        wout=p["wout"] * s3[:, None],                               # (oup, 4*hid)
        b3=t3.reshape(oup, 1),                                      # (oup, 1)
    )


# ----------------------------------------------------------------------------
# Pure-JAX reference (raw params, NCHW) for correctness check.
# ----------------------------------------------------------------------------
def reference_forward(x, p):
    hid = p["w1"].shape[0]
    oup = p["wout"].shape[0]
    dn = ("NCHW", "OIHW", "NCHW")

    def bn(v, g, beta, m, var):
        s = g / jnp.sqrt(var + BN_EPS)
        return v * s.reshape(1, -1, 1, 1) + (beta - m * s).reshape(1, -1, 1, 1)

    y = lax.conv_general_dilated(x, p["w1"].reshape(hid, -1, 1, 1), (1, 1), "VALID",
                                 dimension_numbers=dn)
    y = y + p["b1"].reshape(1, -1, 1, 1)
    y = jnp.clip(bn(y, p["g1"], p["beta1"], p["m1"], p["v1"]), 0.0, 6.0)

    branches = []
    for bi, d in enumerate(DILATIONS):
        w = jnp.transpose(p["dww"][bi], (2, 0, 1)).reshape(hid, 1, 3, 3)
        c = lax.conv_general_dilated(y, w, (1, 1), [(d, d), (d, d)],
                                     rhs_dilation=(d, d), dimension_numbers=dn,
                                     feature_group_count=hid)
        branches.append(c + p["dwb"][bi].reshape(1, -1, 1, 1))
    cat = jnp.concatenate(branches, axis=1)
    cat = jnp.clip(bn(cat, p["g2"], p["beta2"], p["m2"], p["v2"]), 0.0, 6.0)

    z = lax.conv_general_dilated(cat, p["wout"].reshape(oup, -1, 1, 1), (1, 1), "VALID",
                                 dimension_numbers=dn)
    z = jnp.clip(bn(z, p["g3"], p["beta3"], p["m3"], p["v3"]), 0.0, 6.0)
    return z + x


if __name__ == "__main__":
    key = jax.random.PRNGKey(0)
    kx, kp = jax.random.split(key)

    N, inp, oup, H, W = 2, 16, 16, 16, 16          # hidden_dim = inp // 2 = 8
    x = jax.random.normal(kx, (N, inp, H, W), jnp.float32)   # NCHW, like torch

    raw = init_raw_params(kp, inp, oup, shrink_rate=2)
    kparams = fold_params(raw)

    out = jax.block_until_ready(multidilation_forward(x, kparams))
    assert out.shape == (N, oup, H, W)

    ref = reference_forward(x, raw)
    # tolerance accounts for MXU default-precision f32 matmuls + folded BN scales
    np.testing.assert_allclose(np.asarray(out), np.asarray(ref),
                               rtol=5e-4, atol=5e-4)
    print("KERNEL_OK")
</pallas_src>

<mosaic_0001>
module attributes {stable_mosaic.version = 11 : i64} {
  func.func @kernel(%arg0: i32, %arg1: memref<1x16x256xf32, #tpu.memory_space<vmem>>, %arg2: memref<8x16xf32, #tpu.memory_space<vmem>>, %arg3: memref<8x1xf32, #tpu.memory_space<vmem>>, %arg4: memref<8x36xf32, #tpu.memory_space<vmem>>, %arg5: memref<8x4xf32, #tpu.memory_space<vmem>>, %arg6: memref<16x32xf32, #tpu.memory_space<vmem>>, %arg7: memref<16x1xf32, #tpu.memory_space<vmem>>, %arg8: memref<36x256xf32, #tpu.memory_space<vmem>>, %arg9: memref<1x16x256xf32, #tpu.memory_space<vmem>>) attributes {dimension_semantics = [#tpu.dimension_semantics<parallel>], iteration_bounds = array<i64: 2>, scalar_prefetch = 0 : i64, scratch_operands = 0 : i64, tpu.core_type = #tpu.core_type<tc>, window_params = [{transform_indices = @transform_0, window_bounds = array<i64: 1, 16, 256>}, {pipeline_mode = #tpu.pipeline_mode<synchronous>, transform_indices = @transform_1, window_bounds = array<i64: 8, 16>}, {pipeline_mode = #tpu.pipeline_mode<synchronous>, transform_indices = @transform_2, window_bounds = array<i64: 8, 1>}, {pipeline_mode = #tpu.pipeline_mode<synchronous>, transform_indices = @transform_3, window_bounds = array<i64: 8, 36>}, {pipeline_mode = #tpu.pipeline_mode<synchronous>, transform_indices = @transform_4, window_bounds = array<i64: 8, 4>}, {pipeline_mode = #tpu.pipeline_mode<synchronous>, transform_indices = @transform_5, window_bounds = array<i64: 16, 32>}, {pipeline_mode = #tpu.pipeline_mode<synchronous>, transform_indices = @transform_6, window_bounds = array<i64: 16, 1>}, {pipeline_mode = #tpu.pipeline_mode<synchronous>, transform_indices = @transform_7, window_bounds = array<i64: 36, 256>}, {transform_indices = @transform_8, window_bounds = array<i64: 1, 16, 256>}]} {
    %c0 = arith.constant 0 : index
    %c0_0 = arith.constant 0 : index
    %c0_1 = arith.constant 0 : index
    %0 = vector.load %arg1[%c0, %c0_0, %c0_1] : memref<1x16x256xf32, #tpu.memory_space<vmem>>, vector<1x16x256xf32>
    %1 = vector.shape_cast %0 : vector<1x16x256xf32> to vector<16x256xf32>
    %c0_2 = arith.constant 0 : index
    %c0_3 = arith.constant 0 : index
    %2 = vector.load %arg2[%c0_2, %c0_3] : memref<8x16xf32, #tpu.memory_space<vmem>>, vector<8x16xf32>
    %cst = arith.constant dense<0.000000e+00> : vector<8x256xf32>
    %3 = tpu.matmul %2, %1, %cst {dimension_numbers = #tpu.dot_dimension_numbers<[1], [0], [0], [1], [0, 0, 1, 1], [], []>} : vector<8x16xf32>, vector<16x256xf32>, vector<8x256xf32> -> vector<8x256xf32>
    %c0_4 = arith.constant 0 : index
    %c0_5 = arith.constant 0 : index
    %4 = vector.load %arg3[%c0_4, %c0_5] : memref<8x1xf32, #tpu.memory_space<vmem>>, vector<8x1xf32>
    %5 = vector.broadcast %4 : vector<8x1xf32> to vector<8x256xf32>
    %6 = arith.addf %3, %5 : vector<8x256xf32>
    %cst_6 = arith.constant 0.000000e+00 : f32
    %cst_7 = arith.constant 6.000000e+00 : f32
    %7 = vector.broadcast %cst_6 : f32 to vector<8x256xf32>
    %8 = arith.maximumf %7, %6 : vector<8x256xf32>
    %9 = vector.broadcast %cst_7 : f32 to vector<8x256xf32>
    %10 = arith.minimumf %9, %8 : vector<8x256xf32>
    %c0_8 = arith.constant 0 : index
    %c0_9 = arith.constant 0 : index
    %11 = vector.load %arg4[%c0_8, %c0_9] : memref<8x36xf32, #tpu.memory_space<vmem>>, vector<8x36xf32>
    %c0_10 = arith.constant 0 : index
    %c0_11 = arith.constant 0 : index
    %12 = vector.load %arg5[%c0_10, %c0_11] : memref<8x4xf32, #tpu.memory_space<vmem>>, vector<8x4xf32>
    %13 = vector.extract_strided_slice %11 {offsets = [0, 4], sizes = [8, 1], strides = [1, 1]} : vector<8x36xf32> to vector<8x1xf32>
    %14 = vector.broadcast %13 : vector<8x1xf32> to vector<8x256xf32>
    %15 = arith.mulf %10, %14 : vector<8x256xf32>
    %c17_i32 = arith.constant 17 : i32
    %16 = tpu.dynamic_rotate %10 by %c17_i32 dim 1 : vector<8x256xf32>, i32 -> vector<8x256xf32>
    %c0_12 = arith.constant 0 : index
    %c0_13 = arith.constant 0 : index
    %17 = vector.load %arg8[%c0_12, %c0_13] : memref<36x256xf32, #tpu.memory_space<vmem>>, vector<1x256xf32>
    %18 = vector.broadcast %17 : vector<1x256xf32> to vector<8x256xf32>
    %19 = arith.mulf %16, %18 : vector<8x256xf32>
    %20 = vector.extract_strided_slice %11 {offsets = [0, 0], sizes = [8, 1], strides = [1, 1]} : vector<8x36xf32> to vector<8x1xf32>
    %21 = vector.broadcast %20 : vector<8x1xf32> to vector<8x256xf32>
    %22 = arith.mulf %19, %21 : vector<8x256xf32>
    %23 = arith.addf %15, %22 : vector<8x256xf32>
    %c16_i32 = arith.constant 16 : i32
    %24 = tpu.dynamic_rotate %10 by %c16_i32 dim 1 : vector<8x256xf32>, i32 -> vector<8x256xf32>
    %c1 = arith.constant 1 : index
    %c0_14 = arith.constant 0 : index
    %25 = vector.load %arg8[%c1, %c0_14] : memref<36x256xf32, #tpu.memory_space<vmem>>, vector<1x256xf32>
    %26 = vector.broadcast %25 : vector<1x256xf32> to vector<8x256xf32>
    %27 = arith.mulf %24, %26 : vector<8x256xf32>
    %28 = vector.extract_strided_slice %11 {offsets = [0, 1], sizes = [8, 1], strides = [1, 1]} : vector<8x36xf32> to vector<8x1xf32>
    %29 = vector.broadcast %28 : vector<8x1xf32> to vector<8x256xf32>
    %30 = arith.mulf %27, %29 : vector<8x256xf32>
    %31 = arith.addf %23, %30 : vector<8x256xf32>
    %c15_i32 = arith.constant 15 : i32
    %32 = tpu.dynamic_rotate %10 by %c15_i32 dim 1 : vector<8x256xf32>, i32 -> vector<8x256xf32>
    %c2 = arith.constant 2 : index
    %c0_15 = arith.constant 0 : index
    %33 = vector.load %arg8[%c2, %c0_15] : memref<36x256xf32, #tpu.memory_space<vmem>>, vector<1x256xf32>
    %34 = vector.broadcast %33 : vector<1x256xf32> to vector<8x256xf32>
    %35 = arith.mulf %32, %34 : vector<8x256xf32>
    %36 = vector.extract_strided_slice %11 {offsets = [0, 2], sizes = [8, 1], strides = [1, 1]} : vector<8x36xf32> to vector<8x1xf32>
    %37 = vector.broadcast %36 : vector<8x1xf32> to vector<8x256xf32>
    %38 = arith.mulf %35, %37 : vector<8x256xf32>
    %39 = arith.addf %31, %38 : vector<8x256xf32>
    %c1_i32 = arith.constant 1 : i32
    %40 = tpu.dynamic_rotate %10 by %c1_i32 dim 1 : vector<8x256xf32>, i32 -> vector<8x256xf32>
    %c3 = arith.constant 3 : index
    %c0_16 = arith.constant 0 : index
    %41 = vector.load %arg8[%c3, %c0_16] : memref<36x256xf32, #tpu.memory_space<vmem>>, vector<1x256xf32>
    %42 = vector.broadcast %41 : vector<1x256xf32> to vector<8x256xf32>
    %43 = arith.mulf %40, %42 : vector<8x256xf32>
    %44 = vector.extract_strided_slice %11 {offsets = [0, 3], sizes = [8, 1], strides = [1, 1]} : vector<8x36xf32> to vector<8x1xf32>
    %45 = vector.broadcast %44 : vector<8x1xf32> to vector<8x256xf32>
    %46 = arith.mulf %43, %45 : vector<8x256xf32>
    %47 = arith.addf %39, %46 : vector<8x256xf32>
    %c255_i32 = arith.constant 255 : i32
    %48 = tpu.dynamic_rotate %10 by %c255_i32 dim 1 : vector<8x256xf32>, i32 -> vector<8x256xf32>
    %c5 = arith.constant 5 : index
    %c0_17 = arith.constant 0 : index
    %49 = vector.load %arg8[%c5, %c0_17] : memref<36x256xf32, #tpu.memory_space<vmem>>, vector<1x256xf32>
    %50 = vector.broadcast %49 : vector<1x256xf32> to vector<8x256xf32>
    %51 = arith.mulf %48, %50 : vector<8x256xf32>
    %52 = vector.extract_strided_slice %11 {offsets = [0, 5], sizes = [8, 1], strides = [1, 1]} : vector<8x36xf32> to vector<8x1xf32>
    %53 = vector.broadcast %52 : vector<8x1xf32> to vector<8x256xf32>
    %54 = arith.mulf %51, %53 : vector<8x256xf32>
    %55 = arith.addf %47, %54 : vector<8x256xf32>
    %c241_i32 = arith.constant 241 : i32
    %56 = tpu.dynamic_rotate %10 by %c241_i32 dim 1 : vector<8x256xf32>, i32 -> vector<8x256xf32>
    %c6 = arith.constant 6 : index
    %c0_18 = arith.constant 0 : index
    %57 = vector.load %arg8[%c6, %c0_18] : memref<36x256xf32, #tpu.memory_space<vmem>>, vector<1x256xf32>
    %58 = vector.broadcast %57 : vector<1x256xf32> to vector<8x256xf32>
    %59 = arith.mulf %56, %58 : vector<8x256xf32>
    %60 = vector.extract_strided_slice %11 {offsets = [0, 6], sizes = [8, 1], strides = [1, 1]} : vector<8x36xf32> to vector<8x1xf32>
    %61 = vector.broadcast %60 : vector<8x1xf32> to vector<8x256xf32>
    %62 = arith.mulf %59, %61 : vector<8x256xf32>
    %63 = arith.addf %55, %62 : vector<8x256xf32>
    %c240_i32 = arith.constant 240 : i32
    %64 = tpu.dynamic_rotate %10 by %c240_i32 dim 1 : vector<8x256xf32>, i32 -> vector<8x256xf32>
    %c7 = arith.constant 7 : index
    %c0_19 = arith.constant 0 : index
    %65 = vector.load %arg8[%c7, %c0_19] : memref<36x256xf32, #tpu.memory_space<vmem>>, vector<1x256xf32>
    %66 = vector.broadcast %65 : vector<1x256xf32> to vector<8x256xf32>
    %67 = arith.mulf %64, %66 : vector<8x256xf32>
    %68 = vector.extract_strided_slice %11 {offsets = [0, 7], sizes = [8, 1], strides = [1, 1]} : vector<8x36xf32> to vector<8x1xf32>
    %69 = vector.broadcast %68 : vector<8x1xf32> to vector<8x256xf32>
    %70 = arith.mulf %67, %69 : vector<8x256xf32>
    %71 = arith.addf %63, %70 : vector<8x256xf32>
    %c239_i32 = arith.constant 239 : i32
    %72 = tpu.dynamic_rotate %10 by %c239_i32 dim 1 : vector<8x256xf32>, i32 -> vector<8x256xf32>
    %c8 = arith.constant 8 : index
    %c0_20 = arith.constant 0 : index
    %73 = vector.load %arg8[%c8, %c0_20] : memref<36x256xf32, #tpu.memory_space<vmem>>, vector<1x256xf32>
    %74 = vector.broadcast %73 : vector<1x256xf32> to vector<8x256xf32>
    %75 = arith.mulf %72, %74 : vector<8x256xf32>
    %76 = vector.extract_strided_slice %11 {offsets = [0, 8], sizes = [8, 1], strides = [1, 1]} : vector<8x36xf32> to vector<8x1xf32>
    %77 = vector.broadcast %76 : vector<8x1xf32> to vector<8x256xf32>
    %78 = arith.mulf %75, %77 : vector<8x256xf32>
    %79 = arith.addf %71, %78 : vector<8x256xf32>
    %80 = vector.extract_strided_slice %12 {offsets = [0, 0], sizes = [8, 1], strides = [1, 1]} : vector<8x4xf32> to vector<8x1xf32>
    %81 = vector.broadcast %80 : vector<8x1xf32> to vector<8x256xf32>
    %82 = arith.addf %79, %81 : vector<8x256xf32>
    %cst_21 = arith.constant 0.000000e+00 : f32
    %cst_22 = arith.constant 6.000000e+00 : f32
    %83 = vector.broadcast %cst_21 : f32 to vector<8x256xf32>
    %84 = arith.maximumf %83, %82 : vector<8x256xf32>
    %85 = vector.broadcast %cst_22 : f32 to vector<8x256xf32>
    %86 = arith.minimumf %85, %84 : vector<8x256xf32>
    %87 = vector.extract_strided_slice %11 {offsets = [0, 13], sizes = [8, 1], strides = [1, 1]} : vector<8x36xf32> to vector<8x1xf32>
    %88 = vector.broadcast %87 : vector<8x1xf32> to vector<8x256xf32>
    %89 = arith.mulf %10, %88 : vector<8x256xf32>
    %c51_i32 = arith.constant 51 : i32
    %90 = tpu.dynamic_rotate %10 by %c51_i32 dim 1 : vector<8x256xf32>, i32 -> vector<8x256xf32>
    %c9 = arith.constant 9 : index
    %c0_23 = arith.constant 0 : index
    %91 = vector.load %arg8[%c9, %c0_23] : memref<36x256xf32, #tpu.memory_space<vmem>>, vector<1x256xf32>
    %92 = vector.broadcast %91 : vector<1x256xf32> to vector<8x256xf32>
    %93 = arith.mulf %90, %92 : vector<8x256xf32>
    %94 = vector.extract_strided_slice %11 {offsets = [0, 9], sizes = [8, 1], strides = [1, 1]} : vector<8x36xf32> to vector<8x1xf32>
    %95 = vector.broadcast %94 : vector<8x1xf32> to vector<8x256xf32>
    %96 = arith.mulf %93, %95 : vector<8x256xf32>
    %97 = arith.addf %89, %96 : vector<8x256xf32>
    %c48_i32 = arith.constant 48 : i32
    %98 = tpu.dynamic_rotate %10 by %c48_i32 dim 1 : vector<8x256xf32>, i32 -> vector<8x256xf32>
    %c10 = arith.constant 10 : index
    %c0_24 = arith.constant 0 : index
    %99 = vector.load %arg8[%c10, %c0_24] : memref<36x256xf32, #tpu.memory_space<vmem>>, vector<1x256xf32>
    %100 = vector.broadcast %99 : vector<1x256xf32> to vector<8x256xf32>
    %101 = arith.mulf %98, %100 : vector<8x256xf32>
    %102 = vector.extract_strided_slice %11 {offsets = [0, 10], sizes = [8, 1], strides = [1, 1]} : vector<8x36xf32> to vector<8x1xf32>
    %103 = vector.broadcast %102 : vector<8x1xf32> to vector<8x256xf32>
    %104 = arith.mulf %101, %103 : vector<8x256xf32>
    %105 = arith.addf %97, %104 : vector<8x256xf32>
    %c45_i32 = arith.constant 45 : i32
    %106 = tpu.dynamic_rotate %10 by %c45_i32 dim 1 : vector<8x256xf32>, i32 -> vector<8x256xf32>
    %c11 = arith.constant 11 : index
    %c0_25 = arith.constant 0 : index
    %107 = vector.load %arg8[%c11, %c0_25] : memref<36x256xf32, #tpu.memory_space<vmem>>, vector<1x256xf32>
    %108 = vector.broadcast %107 : vector<1x256xf32> to vector<8x256xf32>
    %109 = arith.mulf %106, %108 : vector<8x256xf32>
    %110 = vector.extract_strided_slice %11 {offsets = [0, 11], sizes = [8, 1], strides = [1, 1]} : vector<8x36xf32> to vector<8x1xf32>
    %111 = vector.broadcast %110 : vector<8x1xf32> to vector<8x256xf32>
    %112 = arith.mulf %109, %111 : vector<8x256xf32>
    %113 = arith.addf %105, %112 : vector<8x256xf32>
    %c3_i32 = arith.constant 3 : i32
    %114 = tpu.dynamic_rotate %10 by %c3_i32 dim 1 : vector<8x256xf32>, i32 -> vector<8x256xf32>
    %c12 = arith.constant 12 : index
    %c0_26 = arith.constant 0 : index
    %115 = vector.load %arg8[%c12, %c0_26] : memref<36x256xf32, #tpu.memory_space<vmem>>, vector<1x256xf32>
    %116 = vector.broadcast %115 : vector<1x256xf32> to vector<8x256xf32>
    %117 = arith.mulf %114, %116 : vector<8x256xf32>
    %118 = vector.extract_strided_slice %11 {offsets = [0, 12], sizes = [8, 1], strides = [1, 1]} : vector<8x36xf32> to vector<8x1xf32>
    %119 = vector.broadcast %118 : vector<8x1xf32> to vector<8x256xf32>
    %120 = arith.mulf %117, %119 : vector<8x256xf32>
    %121 = arith.addf %113, %120 : vector<8x256xf32>
    %c253_i32 = arith.constant 253 : i32
    %122 = tpu.dynamic_rotate %10 by %c253_i32 dim 1 : vector<8x256xf32>, i32 -> vector<8x256xf32>
    %c14 = arith.constant 14 : index
    %c0_27 = arith.constant 0 : index
    %123 = vector.load %arg8[%c14, %c0_27] : memref<36x256xf32, #tpu.memory_space<vmem>>, vector<1x256xf32>
    %124 = vector.broadcast %123 : vector<1x256xf32> to vector<8x256xf32>
    %125 = arith.mulf %122, %124 : vector<8x256xf32>
    %126 = vector.extract_strided_slice %11 {offsets = [0, 14], sizes = [8, 1], strides = [1, 1]} : vector<8x36xf32> to vector<8x1xf32>
    %127 = vector.broadcast %126 : vector<8x1xf32> to vector<8x256xf32>
    %128 = arith.mulf %125, %127 : vector<8x256xf32>
    %129 = arith.addf %121, %128 : vector<8x256xf32>
    %c211_i32 = arith.constant 211 : i32
    %130 = tpu.dynamic_rotate %10 by %c211_i32 dim 1 : vector<8x256xf32>, i32 -> vector<8x256xf32>
    %c15 = arith.constant 15 : index
    %c0_28 = arith.constant 0 : index
    %131 = vector.load %arg8[%c15, %c0_28] : memref<36x256xf32, #tpu.memory_space<vmem>>, vector<1x256xf32>
    %132 = vector.broadcast %131 : vector<1x256xf32> to vector<8x256xf32>
    %133 = arith.mulf %130, %132 : vector<8x256xf32>
    %134 = vector.extract_strided_slice %11 {offsets = [0, 15], sizes = [8, 1], strides = [1, 1]} : vector<8x36xf32> to vector<8x1xf32>
    %135 = vector.broadcast %134 : vector<8x1xf32> to vector<8x256xf32>
    %136 = arith.mulf %133, %135 : vector<8x256xf32>
    %137 = arith.addf %129, %136 : vector<8x256xf32>
    %c208_i32 = arith.constant 208 : i32
    %138 = tpu.dynamic_rotate %10 by %c208_i32 dim 1 : vector<8x256xf32>, i32 -> vector<8x256xf32>
    %c16 = arith.constant 16 : index
    %c0_29 = arith.constant 0 : index
    %139 = vector.load %arg8[%c16, %c0_29] : memref<36x256xf32, #tpu.memory_space<vmem>>, vector<1x256xf32>
    %140 = vector.broadcast %139 : vector<1x256xf32> to vector<8x256xf32>
    %141 = arith.mulf %138, %140 : vector<8x256xf32>
    %142 = vector.extract_strided_slice %11 {offsets = [0, 16], sizes = [8, 1], strides = [1, 1]} : vector<8x36xf32> to vector<8x1xf32>
    %143 = vector.broadcast %142 : vector<8x1xf32> to vector<8x256xf32>
    %144 = arith.mulf %141, %143 : vector<8x256xf32>
    %145 = arith.addf %137, %144 : vector<8x256xf32>
    %c205_i32 = arith.constant 205 : i32
    %146 = tpu.dynamic_rotate %10 by %c205_i32 dim 1 : vector<8x256xf32>, i32 -> vector<8x256xf32>
    %c17 = arith.constant 17 : index
    %c0_30 = arith.constant 0 : index
    %147 = vector.load %arg8[%c17, %c0_30] : memref<36x256xf32, #tpu.memory_space<vmem>>, vector<1x256xf32>
    %148 = vector.broadcast %147 : vector<1x256xf32> to vector<8x256xf32>
    %149 = arith.mulf %146, %148 : vector<8x256xf32>
    %150 = vector.extract_strided_slice %11 {offsets = [0, 17], sizes = [8, 1], strides = [1, 1]} : vector<8x36xf32> to vector<8x1xf32>
    %151 = vector.broadcast %150 : vector<8x1xf32> to vector<8x256xf32>
    %152 = arith.mulf %149, %151 : vector<8x256xf32>
    %153 = arith.addf %145, %152 : vector<8x256xf32>
    %154 = vector.extract_strided_slice %12 {offsets = [0, 1], sizes = [8, 1], strides = [1, 1]} : vector<8x4xf32> to vector<8x1xf32>
    %155 = vector.broadcast %154 : vector<8x1xf32> to vector<8x256xf32>
    %156 = arith.addf %153, %155 : vector<8x256xf32>
    %cst_31 = arith.constant 0.000000e+00 : f32
    %cst_32 = arith.constant 6.000000e+00 : f32
    %157 = vector.broadcast %cst_31 : f32 to vector<8x256xf32>
    %158 = arith.maximumf %157, %156 : vector<8x256xf32>
    %159 = vector.broadcast %cst_32 : f32 to vector<8x256xf32>
    %160 = arith.minimumf %159, %158 : vector<8x256xf32>
    %161 = vector.extract_strided_slice %11 {offsets = [0, 22], sizes = [8, 1], strides = [1, 1]} : vector<8x36xf32> to vector<8x1xf32>
    %162 = vector.broadcast %161 : vector<8x1xf32> to vector<8x256xf32>
    %163 = arith.mulf %10, %162 : vector<8x256xf32>
    %c102_i32 = arith.constant 102 : i32
    %164 = tpu.dynamic_rotate %10 by %c102_i32 dim 1 : vector<8x256xf32>, i32 -> vector<8x256xf32>
    %c18 = arith.constant 18 : index
    %c0_33 = arith.constant 0 : index
    %165 = vector.load %arg8[%c18, %c0_33] : memref<36x256xf32, #tpu.memory_space<vmem>>, vector<1x256xf32>
    %166 = vector.broadcast %165 : vector<1x256xf32> to vector<8x256xf32>
    %167 = arith.mulf %164, %166 : vector<8x256xf32>
    %168 = vector.extract_strided_slice %11 {offsets = [0, 18], sizes = [8, 1], strides = [1, 1]} : vector<8x36xf32> to vector<8x1xf32>
    %169 = vector.broadcast %168 : vector<8x1xf32> to vector<8x256xf32>
    %170 = arith.mulf %167, %169 : vector<8x256xf32>
    %171 = arith.addf %163, %170 : vector<8x256xf32>
    %c96_i32 = arith.constant 96 : i32
    %172 = tpu.dynamic_rotate %10 by %c96_i32 dim 1 : vector<8x256xf32>, i32 -> vector<8x256xf32>
    %c19 = arith.constant 19 : index
    %c0_34 = arith.constant 0 : index
    %173 = vector.load %arg8[%c19, %c0_34] : memref<36x256xf32, #tpu.memory_space<vmem>>, vector<1x256xf32>
    %174 = vector.broadcast %173 : vector<1x256xf32> to vector<8x256xf32>
    %175 = arith.mulf %172, %174 : vector<8x256xf32>
    %176 = vector.extract_strided_slice %11 {offsets = [0, 19], sizes = [8, 1], strides = [1, 1]} : vector<8x36xf32> to vector<8x1xf32>
    %177 = vector.broadcast %176 : vector<8x1xf32> to vector<8x256xf32>
    %178 = arith.mulf %175, %177 : vector<8x256xf32>
    %179 = arith.addf %171, %178 : vector<8x256xf32>
    %c90_i32 = arith.constant 90 : i32
    %180 = tpu.dynamic_rotate %10 by %c90_i32 dim 1 : vector<8x256xf32>, i32 -> vector<8x256xf32>
    %c20 = arith.constant 20 : index
    %c0_35 = arith.constant 0 : index
    %181 = vector.load %arg8[%c20, %c0_35] : memref<36x256xf32, #tpu.memory_space<vmem>>, vector<1x256xf32>
    %182 = vector.broadcast %181 : vector<1x256xf32> to vector<8x256xf32>
    %183 = arith.mulf %180, %182 : vector<8x256xf32>
    %184 = vector.extract_strided_slice %11 {offsets = [0, 20], sizes = [8, 1], strides = [1, 1]} : vector<8x36xf32> to vector<8x1xf32>
    %185 = vector.broadcast %184 : vector<8x1xf32> to vector<8x256xf32>
    %186 = arith.mulf %183, %185 : vector<8x256xf32>
    %187 = arith.addf %179, %186 : vector<8x256xf32>
    %c6_i32 = arith.constant 6 : i32
    %188 = tpu.dynamic_rotate %10 by %c6_i32 dim 1 : vector<8x256xf32>, i32 -> vector<8x256xf32>
    %c21 = arith.constant 21 : index
    %c0_36 = arith.constant 0 : index
    %189 = vector.load %arg8[%c21, %c0_36] : memref<36x256xf32, #tpu.memory_space<vmem>>, vector<1x256xf32>
    %190 = vector.broadcast %189 : vector<1x256xf32> to vector<8x256xf32>
    %191 = arith.mulf %188, %190 : vector<8x256xf32>
    %192 = vector.extract_strided_slice %11 {offsets = [0, 21], sizes = [8, 1], strides = [1, 1]} : vector<8x36xf32> to vector<8x1xf32>
    %193 = vector.broadcast %192 : vector<8x1xf32> to vector<8x256xf32>
    %194 = arith.mulf %191, %193 : vector<8x256xf32>
    %195 = arith.addf %187, %194 : vector<8x256xf32>
    %c250_i32 = arith.constant 250 : i32
    %196 = tpu.dynamic_rotate %10 by %c250_i32 dim 1 : vector<8x256xf32>, i32 -> vector<8x256xf32>
    %c23 = arith.constant 23 : index
    %c0_37 = arith.constant 0 : index
    %197 = vector.load %arg8[%c23, %c0_37] : memref<36x256xf32, #tpu.memory_space<vmem>>, vector<1x256xf32>
    %198 = vector.broadcast %197 : vector<1x256xf32> to vector<8x256xf32>
    %199 = arith.mulf %196, %198 : vector<8x256xf32>
    %200 = vector.extract_strided_slice %11 {offsets = [0, 23], sizes = [8, 1], strides = [1, 1]} : vector<8x36xf32> to vector<8x1xf32>
    %201 = vector.broadcast %200 : vector<8x1xf32> to vector<8x256xf32>
    %202 = arith.mulf %199, %201 : vector<8x256xf32>
    %203 = arith.addf %195, %202 : vector<8x256xf32>
    %c166_i32 = arith.constant 166 : i32
    %204 = tpu.dynamic_rotate %10 by %c166_i32 dim 1 : vector<8x256xf32>, i32 -> vector<8x256xf32>
    %c24 = arith.constant 24 : index
    %c0_38 = arith.constant 0 : index
    %205 = vector.load %arg8[%c24, %c0_38] : memref<36x256xf32, #tpu.memory_space<vmem>>, vector<1x256xf32>
    %206 = vector.broadcast %205 : vector<1x256xf32> to vector<8x256xf32>
    %207 = arith.mulf %204, %206 : vector<8x256xf32>
    %208 = vector.extract_strided_slice %11 {offsets = [0, 24], sizes = [8, 1], strides = [1, 1]} : vector<8x36xf32> to vector<8x1xf32>
    %209 = vector.broadcast %208 : vector<8x1xf32> to vector<8x256xf32>
    %210 = arith.mulf %207, %209 : vector<8x256xf32>
    %211 = arith.addf %203, %210 : vector<8x256xf32>
    %c160_i32 = arith.constant 160 : i32
    %212 = tpu.dynamic_rotate %10 by %c160_i32 dim 1 : vector<8x256xf32>, i32 -> vector<8x256xf32>
    %c25 = arith.constant 25 : index
    %c0_39 = arith.constant 0 : index
    %213 = vector.load %arg8[%c25, %c0_39] : memref<36x256xf32, #tpu.memory_space<vmem>>, vector<1x256xf32>
    %214 = vector.broadcast %213 : vector<1x256xf32> to vector<8x256xf32>
    %215 = arith.mulf %212, %214 : vector<8x256xf32>
    %216 = vector.extract_strided_slice %11 {offsets = [0, 25], sizes = [8, 1], strides = [1, 1]} : vector<8x36xf32> to vector<8x1xf32>
    %217 = vector.broadcast %216 : vector<8x1xf32> to vector<8x256xf32>
    %218 = arith.mulf %215, %217 : vector<8x256xf32>
    %219 = arith.addf %211, %218 : vector<8x256xf32>
    %c154_i32 = arith.constant 154 : i32
    %220 = tpu.dynamic_rotate %10 by %c154_i32 dim 1 : vector<8x256xf32>, i32 -> vector<8x256xf32>
    %c26 = arith.constant 26 : index
    %c0_40 = arith.constant 0 : index
    %221 = vector.load %arg8[%c26, %c0_40] : memref<36x256xf32, #tpu.memory_space<vmem>>, vector<1x256xf32>
    %222 = vector.broadcast %221 : vector<1x256xf32> to vector<8x256xf32>
    %223 = arith.mulf %220, %222 : vector<8x256xf32>
    %224 = vector.extract_strided_slice %11 {offsets = [0, 26], sizes = [8, 1], strides = [1, 1]} : vector<8x36xf32> to vector<8x1xf32>
    %225 = vector.broadcast %224 : vector<8x1xf32> to vector<8x256xf32>
    %226 = arith.mulf %223, %225 : vector<8x256xf32>
    %227 = arith.addf %219, %226 : vector<8x256xf32>
    %228 = vector.extract_strided_slice %12 {offsets = [0, 2], sizes = [8, 1], strides = [1, 1]} : vector<8x4xf32> to vector<8x1xf32>
    %229 = vector.broadcast %228 : vector<8x1xf32> to vector<8x256xf32>
    %230 = arith.addf %227, %229 : vector<8x256xf32>
    %cst_41 = arith.constant 0.000000e+00 : f32
    %cst_42 = arith.constant 6.000000e+00 : f32
    %231 = vector.broadcast %cst_41 : f32 to vector<8x256xf32>
    %232 = arith.maximumf %231, %230 : vector<8x256xf32>
    %233 = vector.broadcast %cst_42 : f32 to vector<8x256xf32>
    %234 = arith.minimumf %233, %232 : vector<8x256xf32>
    %235 = vector.extract_strided_slice %11 {offsets = [0, 31], sizes = [8, 1], strides = [1, 1]} : vector<8x36xf32> to vector<8x1xf32>
    %236 = vector.broadcast %235 : vector<8x1xf32> to vector<8x256xf32>
    %237 = arith.mulf %10, %236 : vector<8x256xf32>
    %c153_i32 = arith.constant 153 : i32
    %238 = tpu.dynamic_rotate %10 by %c153_i32 dim 1 : vector<8x256xf32>, i32 -> vector<8x256xf32>
    %c27 = arith.constant 27 : index
    %c0_43 = arith.constant 0 : index
    %239 = vector.load %arg8[%c27, %c0_43] : memref<36x256xf32, #tpu.memory_space<vmem>>, vector<1x256xf32>
    %240 = vector.broadcast %239 : vector<1x256xf32> to vector<8x256xf32>
    %241 = arith.mulf %238, %240 : vector<8x256xf32>
    %242 = vector.extract_strided_slice %11 {offsets = [0, 27], sizes = [8, 1], strides = [1, 1]} : vector<8x36xf32> to vector<8x1xf32>
    %243 = vector.broadcast %242 : vector<8x1xf32> to vector<8x256xf32>
    %244 = arith.mulf %241, %243 : vector<8x256xf32>
    %245 = arith.addf %237, %244 : vector<8x256xf32>
    %c144_i32 = arith.constant 144 : i32
    %246 = tpu.dynamic_rotate %10 by %c144_i32 dim 1 : vector<8x256xf32>, i32 -> vector<8x256xf32>
    %c28 = arith.constant 28 : index
    %c0_44 = arith.constant 0 : index
    %247 = vector.load %arg8[%c28, %c0_44] : memref<36x256xf32, #tpu.memory_space<vmem>>, vector<1x256xf32>
    %248 = vector.broadcast %247 : vector<1x256xf32> to vector<8x256xf32>
    %249 = arith.mulf %246, %248 : vector<8x256xf32>
    %250 = vector.extract_strided_slice %11 {offsets = [0, 28], sizes = [8, 1], strides = [1, 1]} : vector<8x36xf32> to vector<8x1xf32>
    %251 = vector.broadcast %250 : vector<8x1xf32> to vector<8x256xf32>
    %252 = arith.mulf %249, %251 : vector<8x256xf32>
    %253 = arith.addf %245, %252 : vector<8x256xf32>
    %c135_i32 = arith.constant 135 : i32
    %254 = tpu.dynamic_rotate %10 by %c135_i32 dim 1 : vector<8x256xf32>, i32 -> vector<8x256xf32>
    %c29 = arith.constant 29 : index
    %c0_45 = arith.constant 0 : index
    %255 = vector.load %arg8[%c29, %c0_45] : memref<36x256xf32, #tpu.memory_space<vmem>>, vector<1x256xf32>
    %256 = vector.broadcast %255 : vector<1x256xf32> to vector<8x256xf32>
    %257 = arith.mulf %254, %256 : vector<8x256xf32>
    %258 = vector.extract_strided_slice %11 {offsets = [0, 29], sizes = [8, 1], strides = [1, 1]} : vector<8x36xf32> to vector<8x1xf32>
    %259 = vector.broadcast %258 : vector<8x1xf32> to vector<8x256xf32>
    %260 = arith.mulf %257, %259 : vector<8x256xf32>
    %261 = arith.addf %253, %260 : vector<8x256xf32>
    %c9_i32 = arith.constant 9 : i32
    %262 = tpu.dynamic_rotate %10 by %c9_i32 dim 1 : vector<8x256xf32>, i32 -> vector<8x256xf32>
    %c30 = arith.constant 30 : index
    %c0_46 = arith.constant 0 : index
    %263 = vector.load %arg8[%c30, %c0_46] : memref<36x256xf32, #tpu.memory_space<vmem>>, vector<1x256xf32>
    %264 = vector.broadcast %263 : vector<1x256xf32> to vector<8x256xf32>
    %265 = arith.mulf %262, %264 : vector<8x256xf32>
    %266 = vector.extract_strided_slice %11 {offsets = [0, 30], sizes = [8, 1], strides = [1, 1]} : vector<8x36xf32> to vector<8x1xf32>
    %267 = vector.broadcast %266 : vector<8x1xf32> to vector<8x256xf32>
    %268 = arith.mulf %265, %267 : vector<8x256xf32>
    %269 = arith.addf %261, %268 : vector<8x256xf32>
    %c247_i32 = arith.constant 247 : i32
    %270 = tpu.dynamic_rotate %10 by %c247_i32 dim 1 : vector<8x256xf32>, i32 -> vector<8x256xf32>
    %c32 = arith.constant 32 : index
    %c0_47 = arith.constant 0 : index
    %271 = vector.load %arg8[%c32, %c0_47] : memref<36x256xf32, #tpu.memory_space<vmem>>, vector<1x256xf32>
    %272 = vector.broadcast %271 : vector<1x256xf32> to vector<8x256xf32>
    %273 = arith.mulf %270, %272 : vector<8x256xf32>
    %274 = vector.extract_strided_slice %11 {offsets = [0, 32], sizes = [8, 1], strides = [1, 1]} : vector<8x36xf32> to vector<8x1xf32>
    %275 = vector.broadcast %274 : vector<8x1xf32> to vector<8x256xf32>
    %276 = arith.mulf %273, %275 : vector<8x256xf32>
    %277 = arith.addf %269, %276 : vector<8x256xf32>
    %c121_i32 = arith.constant 121 : i32
    %278 = tpu.dynamic_rotate %10 by %c121_i32 dim 1 : vector<8x256xf32>, i32 -> vector<8x256xf32>
    %c33 = arith.constant 33 : index
    %c0_48 = arith.constant 0 : index
    %279 = vector.load %arg8[%c33, %c0_48] : memref<36x256xf32, #tpu.memory_space<vmem>>, vector<1x256xf32>
    %280 = vector.broadcast %279 : vector<1x256xf32> to vector<8x256xf32>
    %281 = arith.mulf %278, %280 : vector<8x256xf32>
    %282 = vector.extract_strided_slice %11 {offsets = [0, 33], sizes = [8, 1], strides = [1, 1]} : vector<8x36xf32> to vector<8x1xf32>
    %283 = vector.broadcast %282 : vector<8x1xf32> to vector<8x256xf32>
    %284 = arith.mulf %281, %283 : vector<8x256xf32>
    %285 = arith.addf %277, %284 : vector<8x256xf32>
    %c112_i32 = arith.constant 112 : i32
    %286 = tpu.dynamic_rotate %10 by %c112_i32 dim 1 : vector<8x256xf32>, i32 -> vector<8x256xf32>
    %c34 = arith.constant 34 : index
    %c0_49 = arith.constant 0 : index
    %287 = vector.load %arg8[%c34, %c0_49] : memref<36x256xf32, #tpu.memory_space<vmem>>, vector<1x256xf32>
    %288 = vector.broadcast %287 : vector<1x256xf32> to vector<8x256xf32>
    %289 = arith.mulf %286, %288 : vector<8x256xf32>
    %290 = vector.extract_strided_slice %11 {offsets = [0, 34], sizes = [8, 1], strides = [1, 1]} : vector<8x36xf32> to vector<8x1xf32>
    %291 = vector.broadcast %290 : vector<8x1xf32> to vector<8x256xf32>
    %292 = arith.mulf %289, %291 : vector<8x256xf32>
    %293 = arith.addf %285, %292 : vector<8x256xf32>
    %c103_i32 = arith.constant 103 : i32
    %294 = tpu.dynamic_rotate %10 by %c103_i32 dim 1 : vector<8x256xf32>, i32 -> vector<8x256xf32>
    %c35 = arith.constant 35 : index
    %c0_50 = arith.constant 0 : index
    %295 = vector.load %arg8[%c35, %c0_50] : memref<36x256xf32, #tpu.memory_space<vmem>>, vector<1x256xf32>
    %296 = vector.broadcast %295 : vector<1x256xf32> to vector<8x256xf32>
    %297 = arith.mulf %294, %296 : vector<8x256xf32>
    %298 = vector.extract_strided_slice %11 {offsets = [0, 35], sizes = [8, 1], strides = [1, 1]} : vector<8x36xf32> to vector<8x1xf32>
    %299 = vector.broadcast %298 : vector<8x1xf32> to vector<8x256xf32>
    %300 = arith.mulf %297, %299 : vector<8x256xf32>
    %301 = arith.addf %293, %300 : vector<8x256xf32>
    %302 = vector.extract_strided_slice %12 {offsets = [0, 3], sizes = [8, 1], strides = [1, 1]} : vector<8x4xf32> to vector<8x1xf32>
    %303 = vector.broadcast %302 : vector<8x1xf32> to vector<8x256xf32>
    %304 = arith.addf %301, %303 : vector<8x256xf32>
    %cst_51 = arith.constant 0.000000e+00 : f32
    %cst_52 = arith.constant 6.000000e+00 : f32
    %305 = vector.broadcast %cst_51 : f32 to vector<8x256xf32>
    %306 = arith.maximumf %305, %304 : vector<8x256xf32>
    %307 = vector.broadcast %cst_52 : f32 to vector<8x256xf32>
    %308 = arith.minimumf %307, %306 : vector<8x256xf32>
    %309 = tpu.concatenate %86, %160, %234, %308 in 0 : vector<8x256xf32>, vector<8x256xf32>, vector<8x256xf32>, vector<8x256xf32> -> vector<32x256xf32>
    %c0_53 = arith.constant 0 : index
    %c0_54 = arith.constant 0 : index
    %310 = vector.load %arg6[%c0_53, %c0_54] : memref<16x32xf32, #tpu.memory_space<vmem>>, vector<16x32xf32>
    %cst_55 = arith.constant dense<0.000000e+00> : vector<16x256xf32>
    %311 = tpu.matmul %310, %309, %cst_55 {dimension_numbers = #tpu.dot_dimension_numbers<[1], [0], [0], [1], [0, 0, 1, 1], [], []>} : vector<16x32xf32>, vector<32x256xf32>, vector<16x256xf32> -> vector<16x256xf32>
    %c0_56 = arith.constant 0 : index
    %c0_57 = arith.constant 0 : index
    %312 = vector.load %arg7[%c0_56, %c0_57] : memref<16x1xf32, #tpu.memory_space<vmem>>, vector<16x1xf32>
    %313 = vector.broadcast %312 : vector<16x1xf32> to vector<16x256xf32>
    %314 = arith.addf %311, %313 : vector<16x256xf32>
    %cst_58 = arith.constant 0.000000e+00 : f32
    %cst_59 = arith.constant 6.000000e+00 : f32
    %315 = vector.broadcast %cst_58 : f32 to vector<16x256xf32>
    %316 = arith.maximumf %315, %314 : vector<16x256xf32>
    %317 = vector.broadcast %cst_59 : f32 to vector<16x256xf32>
    %318 = arith.minimumf %317, %316 : vector<16x256xf32>
    %319 = arith.addf %318, %1 : vector<16x256xf32>
    %c0_60 = arith.constant 0 : index
    %c0_61 = arith.constant 0 : index
    %c0_62 = arith.constant 0 : index
    %320 = vector.load %arg9[%c0_60, %c0_61, %c0_62] : memref<1x16x256xf32, #tpu.memory_space<vmem>>, vector<1x16x256xf32>
    %321 = vector.shape_cast %320 : vector<1x16x256xf32> to vector<16x256xf32>
    %322 = vector.shape_cast %319 : vector<16x256xf32> to vector<1x16x256xf32>
    tpu.vector_store %arg9[%c0_60, %c0_61, %c0_62], %322 {strides = array<i32>} : memref<1x16x256xf32, #tpu.memory_space<vmem>>, vector<1x16x256xf32>,
    return
  }
  func.func @transform_0(%arg0: i32) -> (i32, i32, i32) {
    %c0_i32 = arith.constant 0 : i32
    %c0_i32_0 = arith.constant 0 : i32
    %c0_i32_1 = arith.constant 0 : i32
    return %arg0, %c0_i32, %c0_i32_0 : i32, i32, i32
  }
  func.func @transform_1(%arg0: i32) -> (i32, i32) {
    %c0_i32 = arith.constant 0 : i32
    %c0_i32_0 = arith.constant 0 : i32
    %c0_i32_1 = arith.constant 0 : i32
    return %c0_i32, %c0_i32_0 : i32, i32
  }
  func.func @transform_2(%arg0: i32) -> (i32, i32) {
    %c0_i32 = arith.constant 0 : i32
    %c0_i32_0 = arith.constant 0 : i32
    %c0_i32_1 = arith.constant 0 : i32
    return %c0_i32, %c0_i32_0 : i32, i32
  }
  func.func @transform_3(%arg0: i32) -> (i32, i32) {
    %c0_i32 = arith.constant 0 : i32
    %c0_i32_0 = arith.constant 0 : i32
    %c0_i32_1 = arith.constant 0 : i32
    return %c0_i32, %c0_i32_0 : i32, i32
  }
  func.func @transform_4(%arg0: i32) -> (i32, i32) {
    %c0_i32 = arith.constant 0 : i32
    %c0_i32_0 = arith.constant 0 : i32
    %c0_i32_1 = arith.constant 0 : i32
    return %c0_i32, %c0_i32_0 : i32, i32
  }
  func.func @transform_5(%arg0: i32) -> (i32, i32) {
    %c0_i32 = arith.constant 0 : i32
    %c0_i32_0 = arith.constant 0 : i32
    %c0_i32_1 = arith.constant 0 : i32
    return %c0_i32, %c0_i32_0 : i32, i32
  }
  func.func @transform_6(%arg0: i32) -> (i32, i32) {
    %c0_i32 = arith.constant 0 : i32
    %c0_i32_0 = arith.constant 0 : i32
    %c0_i32_1 = arith.constant 0 : i32
    return %c0_i32, %c0_i32_0 : i32, i32
  }
  func.func @transform_7(%arg0: i32) -> (i32, i32) {
    %c0_i32 = arith.constant 0 : i32
    %c0_i32_0 = arith.constant 0 : i32
    %c0_i32_1 = arith.constant 0 : i32
    return %c0_i32, %c0_i32_0 : i32, i32
  }
  func.func @transform_8(%arg0: i32) -> (i32, i32, i32) {
    %c0_i32 = arith.constant 0 : i32
    %c0_i32_0 = arith.constant 0 : i32
    %c0_i32_1 = arith.constant 0 : i32
    return %arg0, %c0_i32, %c0_i32_0 : i32, i32, i32
  }
}

</mosaic_0001>

<bundles_post_ra>
// kernel: tpu_custom_call.1
= control target key start
LH: loop header
LB: loop body
LE: loop exit
PB: predicated region body
PF: predicated region fallthrough
CT: control target
= control target key end

     0   :  { %13 = vsyncpa [#allocation3], 0  ;;  %s3271_s0 = inlined_call_operand.hbm [shape: f32[2,16,256], index: 0, kind: input, shape index: {}]   ;;  %s3272_s1 = inlined_call_operand.vmem [shape: f32[8,16], index: 1, kind: input, shape index: {}]   ;;  %s3273_s2 = inlined_call_operand.vmem [shape: f32[8,1], index: 2, kind: input, shape index: {}]   ;;  %s3274_s3 = inlined_call_operand.vmem [shape: f32[8,36], index: 3, kind: input, shape index: {}]   ;;  %s3275_s4 = inlined_call_operand.vmem [shape: f32[8,4], index: 4, kind: input, shape index: {}]   ;;  %s3276_s5 = inlined_call_operand.vmem [shape: f32[16,32], index: 5, kind: input, shape index: {}]   ;;  %s3277_s6 = inlined_call_operand.vmem [shape: f32[16,1], index: 6, kind: input, shape index: {}]   ;;  %s3278_s7 = inlined_call_operand.hbm [shape: f32[36,256], index: 7, kind: input, shape index: {}]   ;;  %s3279_s8 = inlined_call_operand.hbm [shape: f32[2,16,256], index: 8, kind: output, shape index: {}]  }
   0x1   :  { %15 = vsyncpa [#allocation3 + $0x1], 0 }
   0x2   :  { %16 = vsyncpa [#allocation6], 0 }
   0x3   :  { %17 = vsyncpa [#allocation4], 0 }
   0x4   :  { %19 = vsyncpa [#allocation4 + $0x1], 0  ;;  %s2109_s27 = smov 0   ;;  %s2111_s28 = smov 0  }
   0x5   :  { %s2113_s29 = smov 0   ;;  %s2115_s30 = smov 0  }
   0x6 LB: > { %s2130_s9 = sadd.s32 4294967295, %s1989_s30   ;;  %s1655_s10 = sadd.s32 4294967294, %s1989_s30   ;;  %s1989_s30 = sphi %s2115_s30, %s3445_s30   ;;  %s1985_s29 = sphi %s2113_s29, %s3448_s29   ;;  %s1981_s28 = sphi %s2111_s28, %s3447_s28   ;;  %s1977_s27 = sphi %s2109_s27, %s3446_s27  }
   0x7   : > { %p45_p0 = scmp.ne.s32.totalorder %s1981_s28, %s1977_s27  ;;  %p3280_p1 = scmp.eq.s32.totalorder %s2130_s9, 0 }
   0x8   : > { %p222_p3 = scmp.eq.s32.totalorder %s1655_s10, 1  ;;  %p1656_p5 = scmp.ge.s32.totalorder %s1989_s30, 1 }
   0x9   : > { %p2139_p4 = por %p3280_p1, %p45_p0  ;;  %p229_p7 = scmp.lt.s32.totalorder %s1989_s30, 3 }
   0xa   : > { %p2144_p6 = por %p222_p3, %p45_p0  ;;  %s1991_s14 = smov [#allocation5]  }
   0xb   : > { %s3329_s11 = scalar_select %p2139_p4, 1, 0 }
   0xc   : > { %s3330_s12 = scalar_select %p2144_p6, 1, 0 }
   0xd   : > { %p2149_p8 = pnand %p1656_p5, %p229_p7  ;;  %s259_s15 = sshll.u32 %s1991_s14, 4  ;;  %s2153_s15 = int_to_ptr.vmem [resolvable:$true] %s259_s15 }
   0xe   : > { %s2165_s17 = sadd.s32 1, %s1989_s30   ;;  %s32_s18 = sadd.s32 1, %s1985_s29 }
   0xf   : > { %s3331_s13 = scalar_select %p2149_p8, 1, 0 }
  0x10   : > { %p1696_p9 = pneg %p2149_p8  ;;  %3333 = sst [smem:[#allocation11_spill]] %s2165_s17 }
  0x11   : > { %s29_s19 = ssub.s32 %s1989_s30, %s2165_s17  ;;  %s1861_s22 = scalar_lea.hbm %s3278_s7, 1280 }
  0x12   : > { %p2160_p11 = pnand %p1696_p9, %p3280_p1  ;;  %p1862_p12 = scmp.ne.s32.totalorder %s3278_s7, %s1861_s22 }
  0x13   : > { %p1868_p5 = scmp.lt.u32.totalorder %s1861_s22, %s3278_s7 }
  0x14   : > { %p1863_p13 = pneg %p2160_p11 }
  0x16   : > { %p1864_p0 = pnand %p1863_p13, %p1862_p12 }
  0x18   : > { %p1865_p3 = pneg %p1864_p0 }
  0x1a   : > { %p1870_p7 = pnand %p1868_p5, %p1865_p3 }
  0x1c   : > { %1873 = shalt.err (!%p1870_p7)
}
  0x1d   : > { %s1874_s10 = scalar_lea.vmem %s2153_s15, 1280  ;;  %p1882_p2 = scmp.lt.s32.totalorder %s2153_s15, %s2153_s15 }
  0x1e   : > { %p1875_p9 = scmp.ne.s32.totalorder %s2153_s15, %s1874_s10  ;;  %p1883_p6 = scmp.lt.s32.totalorder %s1874_s10, %s1874_s10 }
  0x20   : > { %p1877_p10 = pnand %p1875_p9, %p1863_p13  ;;  %p1884_p4 = por %p1883_p6, %p1882_p2 }
  0x22   : > { %p1878_p1 = pneg %p1877_p10 }
  0x24   : > { %p1885_p8 = pnand %p1884_p4, %p1878_p1 }
  0x26   : > { %1888 = shalt.err (!%p1885_p8)
}
  0x27   : > { %s3285_s14 = smov 256   ;;  %s1993_s20 = smov 16  }
  0x28   : > { %1699 = dma.hbm_to_vmem [thread:$0]  (!%p2160_p11), %s3278_s7, 1280, %s2153_s15, [#allocation6], %s3285_s14, %s3285_s14, %s1993_s20  }
  0x29   : > { %p30_p1 = scmp.eq.s32.totalorder %s29_s19, 0  ;;  %p39_p2 = scmp.ne.s32.totalorder %s1985_s29, %s1981_s28 }
  0x2a   : > { %p40_p4 = scmp.eq.s32.totalorder %s1989_s30, 0  ;;  %p1709_p6 = scmp.lt.s32.totalorder %s1989_s30, 2 }
  0x2b   : > { %s2199_s23 = scalar_select %p30_p1, %s1985_s29, %s32_s18  }
  0x2c   : > { %p41_p8 = por %p40_p4, %p39_p2  ;;  %p3334_p10 = scmp.eq.s32.totalorder %s2130_s9, 1 }
  0x2d   : > { %s273_s16 = sand.u32 1, %s1985_s29   ;;  %s1674_s25 = sshll.u32 %s1989_s30, 9 }
  0x2e   : > { %p2203_p12 = por %p3334_p10, %p39_p2  ;;  %s1659_s26 = sshll.u32 %s273_s16, 5 }
  0x2f   : > { %s2212_s21 = scalar_lea.hbm %s3271_s0, %s1674_s25  ;;  %s277_s15 = scalar_lea.vmem [#allocation2], %s1659_s26 }
  0x30   : > { %s284_s18 = sshll.u32 %s277_s15, 4  ;;  %p2214_p11 = pnand %p1709_p6, %p41_p8  ;;  %s2218_s18 = int_to_ptr.vmem [resolvable:$true] %s284_s18 }
  0x31   : > { %s2220_s22 = scalar_lea.sflag [#allocation3], %s273_s16  ;;  %s1889_s14 = scalar_lea.hbm %s2212_s21, 512 }
  0x32   : > { %p1890_p13 = scmp.ne.s32.totalorder %s2212_s21, %s1889_s14  ;;  %p1891_p0 = pneg %p2214_p11 }
  0x33   : > { %s1894_s26 = scalar_lea.hbm %s3271_s0, 1024  ;;  %p1895_p7 = scmp.lt.u32.totalorder %s2212_s21, %s3271_s0 }
  0x34   : > { %p1892_p3 = pnand %p1891_p0, %p1890_p13  ;;  %p1896_p9 = scmp.lt.u32.totalorder %s1894_s26, %s1889_s14 }
  0x35   : > { %p1898_p2 = scmp.lt.u32.totalorder %s1889_s14, %s2212_s21 }
  0x36   : > { %p1893_p5 = pneg %p1892_p3  ;;  %p1897_p1 = por %p1896_p9, %p1895_p7 }
  0x38   : > { %p1899_p4 = por %p1898_p2, %p1897_p1 }
  0x3a   : > { %p1900_p6 = pnand %p1899_p4, %p1893_p5 }
  0x3c   : > { %1903 = shalt.err (!%p1900_p6)
}
  0x3d   : > { %s1904_s16 = scalar_lea.vmem %s2218_s18, 512  ;;  %s1994_s17 = smov [#allocation2]  }
  0x3e   : > { %p1905_p8 = scmp.ne.s32.totalorder %s2218_s18, %s1904_s16  ;;  %s1909_s25 = sshll.u32 %s1994_s17, 4  ;;  %s1910_s25 = int_to_ptr.vmem [resolvable:$false] %s1909_s25 }
  0x3f   : > { %s1911_s10 = scalar_lea.vmem %s1910_s25, 1024  ;;  %p1912_p3 = scmp.lt.s32.totalorder %s2218_s18, %s1910_s25 }
  0x40   : > { %p1907_p10 = pnand %p1905_p8, %p1891_p0  ;;  %p1913_p7 = scmp.lt.s32.totalorder %s1911_s10, %s1904_s16 }
  0x42   : > { %p1908_p13 = pneg %p1907_p10  ;;  %p1914_p9 = por %p1913_p7, %p1912_p3 }
  0x44   : > { %p1915_p1 = pnand %p1914_p9, %p1908_p13 }
  0x46   : > { %1918 = shalt.err (!%p1915_p1)
}
  0x47   : > { %s3337_s14 = smov 256   ;;  %p3338_p0 = scmp.ne.s32.totalorder %s3331_s13, 0 }
  0x48   : > { %1703 = dma.hbm_to_vmem [thread:$0]  (!%p2214_p11), %s2212_s21, 512, %s2218_s18, %s2220_s22, %s3337_s14, %s3337_s14, %s1993_s20  }
  0x49   : > { %296 = sbr.rel (%p3338_p0) target bundleno = 882 (0x372), region = 52 }
  0x50   : > { %s2254_s26 = sand.u32 1, %s1981_s28   ;;  %p3339_p5 = scmp.ne.s32.totalorder %s3329_s11, 0 }
  0x51   : > { %s3286_s15 = sshll.u32 %s2254_s26, 5  ;;  %s299_s16 = scalar_lea.sflag [#allocation3], %s2254_s26 }
  0x52   : > { %s2260_s19 = scalar_lea.vmem [#allocation2], %s3286_s15 }
  0x53   : > { %1964 = dma.done.wait (%p3339_p5), %s299_s16, 512  }
  0x54   : > { %1966 = vsyncadd (%p3339_p5), %s299_s16, 4294966784  ;;  %p3340_p11 = scmp.eq.s32.totalorder %s2130_s9, 0 }
  0x56   : > { %1968 = dma.done.wait (%p3340_p11), [#allocation6], 1280   ;;  %p3341_p2 = pmov %p3340_p11 }
  0x57   : > { %v3301_v0 = vmov 0.0   ;;  %v1996_v1 = vmov 0   ;;  %v340_v2 = vld [vmem:[%s2260_s19 + $0x8] sm:$0xff]  ;;  %v342_v3 = vld [vmem:[%s2260_s19 + $0x18] sm:$0xff]  ;;  %v339_v4 = vld [vmem:[%s2260_s19] sm:$0xff]  ;;  %vm350_vm0 = vcmask 130048  }
  0x58   : > { %1970 = vsyncadd (%p3341_p2), [#allocation6], 4294966016  ;;  %418 = vmatprep.mubr.f32.mxu0 %v3301_v0  ;;  %1817 = vset.pattern.permute.xlu1 %v1996_v1  ;;  %v1676_v5 = vpack.c.bf16 %v342_v3, %v340_v2  ;;  %v341_v6 = vld [vmem:[%s2260_s19 + $0x10] sm:$0xff]  ;;  %v2281_v7 = vld [vmem:[%s3274_s3] sm:$0xff]  ;;  %v1997_v11 = vmov 13   ;;  %v1998_v12 = vmov 4  }
  0x59   : > { %1815 = vset.pattern.permute.xlu0 %v1996_v1  ;;  %1529 = vmatprep.mubr.f32.mxu1 %v3301_v0  ;;  %v1678_v8 = vpack.c.bf16 %v341_v6, %v339_v4  ;;  %v344_v9 = vld [vmem:[%s3273_s2] sm:$0xff]  ;;  %v1999_v13 = vmov 9   ;;  %v2000_v14 = vmov 11   ;;  %v2001_v15 = vmov 10   ;;  %s2032_s10 = smov 51   ;;  %s2033_s14 = smov 17  }
  0x5a   : > { %462 = vperm.xlu1 %1817, %v2281_v7   ;;  %1677 = vmatprep.subr.bf16.mxu0 %v1676_v5  ;;  %v343_v10 = vld [vmem:[%s3272_s1] sm:$0xff]  ;;  %v2002_v16 = vmov 31   ;;  %v2003_v17 = vmov 2   ;;  %v2004_v18 = vmov 12   ;;  %v2005_v19 = vmov 22   ;;  %s2034_s16 = smov 48  }
  0x5b   : > { %347 = vperm.xlu0 %1815, %v344_v9   ;;  %1679 = vmatpush1.bf16.msra.mxu0 %v1678_v8  ;;  %v2006_v20 = vmov 5   ;;  %v2007_v21 = vmov 18   ;;  %v2008_v22 = vmov 14   ;;  %v2009_v23 = vmov 27   ;;  %v2328_v43 = vld [vmem:[%s3275_s4] sm:$0xff]  ;;  %s3290_s11 = smov 16  }
  0x5c   : > { %v2010_v24 = vmov 20   ;;  %v2011_v25 = vmov 3   ;;  %v2012_v26 = vmov 29   ;;  %v2013_v27 = vmov 19   ;;  %s2036_s13 = smov 15   ;;  %s2037_s20 = smov 45  }
  0x5d   : > { %v2014_v28 = vmov 6   ;;  %v2015_v29 = vmov 28   ;;  %v2016_v30 = vmov 15   ;;  %v2017_v31 = vmov 30   ;;  %s3288_s21 = smov 125   ;;  %s2039_s18 = smov 102  }
  0x5e   : > { %1818 = vset.pattern.permute.xlu1 %v1997_v11  ;;  %1666 = vmatmul.mubr.msk.f32.vlgmr.msra.gmra.mrb[0].mxu0 %vm350_vm0, %v343_v10  ;;  %v2018_v32 = vmov 21   ;;  %v2019_v33 = vmov 7   ;;  %v2020_v34 = vmov 16   ;;  %v2021_v35 = vmov 23   ;;  %s3287_s22 = smov 80   ;;  %s2041_s17 = smov 25  }
  0x5f   : > { %691 = vperm.xlu1 %1818, %v2281_v7   ;;  %1816 = vset.pattern.permute.xlu0 %v1998_v12  ;;  %v2022_v36 = vmov 32   ;;  %v2023_v37 = vmov 8   ;;  %v2024_v38 = vmov 17   ;;  %v2025_v39 = vmov 24   ;;  %s3289_s25 = smov 122   ;;  %s2043_s15 = smov 1  }
  0x60   : > { %433 = vperm.xlu0 %1816, %v2281_v7   ;;  %v2026_v40 = vmov 33   ;;  %v2027_v41 = vmov 25   ;;  %v2028_v42 = vmov 34   ;;  %v2029_v44 = vmov 1  }
  0x61   : > { %v2030_v45 = vmov 26   ;;  %v2031_v46 = vmov 35  }
  0x63   : > { %1819 = vset.pattern.permute.xlu1 %v1999_v13 }
  0x64   : > { %719 = vperm.xlu1 %1819, %v2281_v7   ;;  %1822 = vset.pattern.permute.xlu0 %v2000_v14 }
  0x65   : > { %779 = vperm.xlu0 %1822, %v2281_v7  }
  0x68   : > { %1820 = vset.pattern.permute.xlu1 %v2001_v15 }
  0x69   : > { %749 = vperm.xlu1 %1820, %v2281_v7   ;;  %1825 = vset.pattern.permute.xlu0 %v2002_v16 }
  0x6a   : > { %1203 = vperm.xlu0 %1825, %v2281_v7  }
  0x6d   : > { %1821 = vset.pattern.permute.xlu1 %v2003_v17 }
  0x6e   : > { %522 = vperm.xlu1 %1821, %v2281_v7   ;;  %1828 = vset.pattern.permute.xlu0 %v2004_v18 }
  0x6f   : > { %809 = vperm.xlu0 %1828, %v2281_v7  }
  0x72   : > { %1823 = vset.pattern.permute.xlu1 %v2005_v19 }
  0x73   : > { %947 = vperm.xlu1 %1823, %v2281_v7   ;;  %1831 = vset.pattern.permute.xlu0 %v2006_v20 }
  0x74   : > { %582 = vperm.xlu0 %1831, %v2281_v7  }
  0x77   : > { %1824 = vset.pattern.permute.xlu1 %v2007_v21 }
  0x78   : > { %975 = vperm.xlu1 %1824, %v2281_v7   ;;  %1832 = vset.pattern.permute.xlu0 %v2008_v22 }
  0x79   : > { %839 = vperm.xlu0 %1832, %v2281_v7  }
  0x7c   : > { %1826 = vset.pattern.permute.xlu1 %v2009_v23 }
  0x7d   : > { %1231 = vperm.xlu1 %1826, %v2281_v7   ;;  %1833 = vset.pattern.permute.xlu0 %v2010_v24 }
  0x7e   : > { %1035 = vperm.xlu0 %1833, %v2281_v7  }
  0x81   : > { %1827 = vset.pattern.permute.xlu1 %v2011_v25 }
  0x82   : > { %552 = vperm.xlu1 %1827, %v2281_v7   ;;  %1834 = vset.pattern.permute.xlu0 %v2012_v26 }
  0x83   : > { %1284 = vperm.xlu0 %1834, %v2281_v7  }
  0x86   : > { %1829 = vset.pattern.permute.xlu1 %v2013_v27 }
  0x87   : > { %1005 = vperm.xlu1 %1829, %v2281_v7   ;;  %1835 = vset.pattern.permute.xlu0 %v2014_v28 }
  0x88   : > { %612 = vperm.xlu0 %1835, %v2281_v7  }
  0x8b   : > { %1830 = vset.pattern.permute.xlu1 %v2015_v29 }
  0x8c   : > { %1254 = vperm.xlu1 %1830, %v2281_v7   ;;  %1836 = vset.pattern.permute.xlu0 %v2016_v30 }
  0x8d   : > { %869 = vperm.xlu0 %1836, %v2281_v7  }
  0x90   : > { %1838 = vset.pattern.permute.xlu1 %v2017_v31 }
  0x91   : > { %1314 = vperm.xlu1 %1838, %v2281_v7   ;;  %1837 = vset.pattern.permute.xlu0 %v2018_v32 }
  0x92   : > { %1065 = vperm.xlu0 %1837, %v2281_v7  }
  0x95   : > { %1839 = vset.pattern.permute.xlu1 %v2019_v33 }
  0x96   : > { %642 = vperm.xlu1 %1839, %v2281_v7   ;;  %1840 = vset.pattern.permute.xlu0 %v2020_v34 }
  0x97   : > { %899 = vperm.xlu0 %1840, %v2281_v7  }
  0x9a   : > { %1855 = vset.pattern.permute.xlu1 %v1996_v1 }
  0x9b   : > { %1841 = vset.pattern.permute.xlu0 %v2021_v35 }
  0x9c   : > { %1095 = vperm.xlu0 %1841, %v2281_v7  }
  0xa0   : > { %1842 = vset.pattern.permute.xlu0 %v2022_v36 }
  0xa1   : > { %1344 = vperm.xlu0 %1842, %v2281_v7  }
  0xa5   : > { %1843 = vset.pattern.permute.xlu0 %v2023_v37 }
  0xa6   : > { %672 = vperm.xlu0 %1843, %v2281_v7  }
  0xaa   : > { %1844 = vset.pattern.permute.xlu0 %v2024_v38 }
  0xab   : > { %929 = vperm.xlu0 %1844, %v2281_v7  }
  0xaf   : > { %1845 = vset.pattern.permute.xlu0 %v2025_v39 }
  0xb0   : > { %1125 = vperm.xlu0 %1845, %v2281_v7  }
  0xb4   : > { %1846 = vset.pattern.permute.xlu0 %v2026_v40 }
  0xb5   : > { %1374 = vperm.xlu0 %1846, %v2281_v7  }
  0xb9   : > { %1847 = vset.pattern.permute.xlu0 %v2027_v41 }
  0xba   : > { %1155 = vperm.xlu0 %1847, %v2281_v7  }
  0xbe   : > { %1848 = vset.pattern.permute.xlu0 %v2028_v42 }
  0xbf   : > { %1397 = vperm.xlu0 %1848, %v2281_v7  }
  0xc3   : > { %1849 = vset.pattern.permute.xlu0 %v1996_v1 }
  0xc4   : > { %681 = vperm.xlu0 %1849, %v2328_v43  }
  0xc8   : > { %1850 = vset.pattern.permute.xlu0 %v2029_v44 }
  0xc9   : > { %492 = vperm.xlu0 %1850, %v2281_v7  }
  0xcd   : > { %937 = vperm.xlu0 %1850, %v2328_v43  }
  0xd1   : > { %1851 = vset.pattern.permute.xlu0 %v2030_v45 }
  0xd2   : > { %1185 = vperm.xlu0 %1851, %v2281_v7  }
  0xd6   : > { %1852 = vset.pattern.permute.xlu0 %v2031_v46 }
  0xd9   : > { %v2380_v59 = vpop.permute.xlu1 %462 }
  0xda   : > { %v348_v47 = vpop.permute.xlu0 %347 }
  0xde   : > { %v2390_v61 = vpop.permute.xlu1 %691 }
  0xdf   : > { %v2362_v56 = vpop.permute.xlu0 %433 }
  0xe3   : > { %v2400_v63 = vpop.permute.xlu1 %719 }
  0xe4   : > { %v2371_v57 = vpop.permute.xlu0 %779 }
  0xe8   : > { %v2407_v3 = vpop.permute.xlu1 %749 }
  0xe9   : > { %v2375_v58 = vpop.permute.xlu0 %1203 }
  0xed   : > { %v2415_v5 = vpop.permute.xlu1 %522 }
  0xee   : > { %v2382_v60 = vpop.permute.xlu0 %809 }
  0xf3   : > { %v2394_v62 = vpop.permute.xlu0 %582 }
  0xf8   : > { %v2402_v2 = vpop.permute.xlu0 %839 }
  0xfd   : > { %v2411_v4 = vpop.permute.xlu0 %1035 }
 0x102   : > { %v2417_v6 = vpop.permute.xlu0 %1284 }
 0x103   : > { %3342 = vst [vmem:[#allocation12_spill] sm:$0xff] %v2417_v6 }
 0x131   : > { %v420_v48 = vpop.f32.mrb[0].mxu0 }
 0x132   : > { %v421_v49 = vadd.f32 %v420_v48, %v348_v47  ;;  %v422_v50 = vpop.f32.mrb[1].mxu0 }
 0x133   : > { %v423_v53 = vadd.f32 %v422_v50, %v348_v47 }
 0x134   : > { %v425_v51 = vmax.f32 %v421_v49, 0.0 }
 0x135   : > { %v426_v54 = vmax.f32 %v423_v53, 0.0  ;;  %v442_v53 = vlaneseq }
 0x136   : > { %v2335_v52 = vmin.f32 %v425_v51, 6.0 }
 0x137   : > { %v2360_v55 = vmin.f32 %v426_v54, 6.0 }
 0x138   : > { %696 = vrot.lane.b32.xlu0 %v2335_v52, %s2032_s10  ;;  %438 = vrot.lane.b32.xlu1 %v2335_v52, %s2033_s14 }
 0x13c   : > { %726 = vrot.lane.b32.xlu0 %v2335_v52, %s2034_s16  ;;  %469 = vrot.lane.b32.xlu1 %v2335_v52, %s3290_s11 }
 0x140   : > { %499 = vrot.lane.b32.xlu0 %v2335_v52, %s2036_s13  ;;  %756 = vrot.lane.b32.xlu1 %v2335_v52, %s2037_s20 }
 0x144   : > { %816 = vrot.lane.b32.xlu0 %v2335_v52, %s3288_s21  ;;  %952 = vrot.lane.b32.xlu1 %v2335_v52, %s2039_s18  ;;  %s3291_s21 = smov 96  }
 0x148   : > { %876 = vrot.lane.b32.xlu0 %v2335_v52, %s3287_s22  ;;  %1208 = vrot.lane.b32.xlu1 %v2335_v52, %s2041_s17  ;;  %s2044_s22 = smov 3  }
 0x14c   : > { %1072 = vrot.lane.b32.xlu0 %v2335_v52, %s3289_s25  ;;  %529 = vrot.lane.b32.xlu1 %v2335_v52, %s2043_s15  ;;  %s2046_s25 = smov 127  }
 0x150   : > { %440 = vrot.lane.b32.xlu0 %v2360_v55, %s2033_s14  ;;  %786 = vrot.lane.b32.xlu1 %v2335_v52, %s2044_s22  ;;  %s3292_s14 = smov 90  }
 0x154   : > { %471 = vrot.lane.b32.xlu0 %v2360_v55, %s3290_s11  ;;  %982 = vrot.lane.b32.xlu1 %v2335_v52, %s3291_s21  ;;  %s3293_s11 = smov 26   ;;  %s3296_s21 = smov 7  }
 0x158   : > { %561 = vrot.lane.b32.xlu0 %v2360_v55, %s2046_s25  ;;  %559 = vrot.lane.b32.xlu1 %v2335_v52, %s2046_s25  ;;  %s3294_s25 = smov 113  }
 0x15c   : > { %1427 = vperm.xlu0 %1852, %v2281_v7   ;;  %1012 = vrot.lane.b32.xlu1 %v2335_v52, %s3292_s14  ;;  %s3295_s14 = smov 83   ;;  %v2425_v7 = vpop.permute.xlu0 %612 }
 0x15d   : > { %3343 = vst [vmem:[#allocation13_spill] sm:$0xff] %v2425_v7 }
 0x160   : > { %1162 = vrot.lane.b32.xlu0 %v2335_v52, %s3293_s11  ;;  %1261 = vrot.lane.b32.xlu1 %v2335_v52, %s3296_s21  ;;  %s3297_s11 = smov 6   ;;  %s3300_s21 = smov 119   ;;  %v2431_v9 = vpop.permute.xlu0 %869 }
 0x161   : > { %1853 = vset.pattern.permute.xlu0 %v2003_v17  ;;  %3344 = vst [vmem:[#allocation14_spill] sm:$0xff] %v2431_v9 }
 0x164   : > { %1193 = vperm.xlu0 %1853, %v2328_v43   ;;  %589 = vrot.lane.b32.xlu1 %v2335_v52, %s3294_s25  ;;  %s3298_s25 = smov 9   ;;  %v2439_v11 = vpop.permute.xlu0 %1065 }
 0x165   : > { %3345 = vst [vmem:[#allocation15_spill] sm:$0xff] %v2439_v11 }
 0x168   : > { %1854 = vset.pattern.permute.xlu0 %v2011_v25  ;;  %846 = vrot.lane.b32.xlu1 %v2335_v52, %s3295_s14  ;;  %s3299_s14 = smov 112   ;;  %v2445_v13 = vpop.permute.xlu0 %899 }
 0x169   : > { %1435 = vperm.xlu0 %1854, %v2328_v43   ;;  %3346 = vst [vmem:[#allocation16_spill] sm:$0xff] %v2445_v13 }
 0x16c   : > { %1042 = vrot.lane.b32.xlu1 %v2335_v52, %s3297_s11  ;;  %s2056_s11 = smov 111   ;;  %v2453_v15 = vpop.permute.xlu0 %1095 }
 0x16d   : > { %1856 = vset.pattern.permute.xlu0 %v1996_v1  ;;  %v2421_v1 = vpop.permute.xlu1 %947  ;;  %3347 = vst [vmem:[#allocation17_spill] sm:$0xff] %v2453_v15 }
 0x170   : > { %1291 = vrot.lane.b32.xlu1 %v2335_v52, %s3298_s25  ;;  %s2057_s25 = smov 77   ;;  %v2459_v17 = vpop.permute.xlu0 %1344 }
 0x171   : > { %v2429_v8 = vpop.permute.xlu1 %975  ;;  %3348 = vst [vmem:[#allocation18_spill] sm:$0xff] %v2459_v17  ;;  %v2578_v17 = vand.u32 127, %v442_v53 }
 0x173   : > { %vm700_vm1 = vcmp.lt.s32.totalorder %v2578_v17, 51  ;;  %vm730_vm2 = vcmp.lt.s32.totalorder %v2578_v17, 48  ;;  %vm444_vm3 = vcmp.lt.s32.totalorder %v2578_v17, 17  ;;  %vm473_vm4 = vcmp.lt.s32.totalorder %v2578_v17, 16 }
 0x174   : > { %619 = vrot.lane.b32.xlu1 %v2335_v52, %s3299_s14  ;;  %s2058_s14 = smov 38   ;;  %v2467_v19 = vpop.permute.xlu0 %672  ;;  %vm760_vm5 = vcmp.lt.s32.totalorder %v2578_v17, 45  ;;  %vm503_vm6 = vcmp.lt.s32.totalorder %v2578_v17, 15  ;;  %vm563_vm7 = vcmp.lt.s32.totalorder %v2578_v17, 127  ;;  %vm956_vm8 = vcmp.lt.s32.totalorder %v2578_v17, 102 }
 0x175   : > { %v2435_v10 = vpop.permute.xlu1 %1231  ;;  %3350 = vst [vmem:[#allocation20_spill] sm:$0xff] %v2467_v19  ;;  %vm533_vm9 = vcmp.lt.s32.totalorder %v2578_v17, 1  ;;  %vm986_vm10 = vcmp.lt.s32.totalorder %v2578_v17, 96  ;;  %vm1212_vm11 = vcmp.lt.s32.totalorder %v2578_v17, 25  ;;  %vm790_vm12 = vcmp.lt.s32.totalorder %v2578_v17, 3 }
 0x176   : > { %vm820_vm13 = vcmp.lt.s32.totalorder %v2578_v17, 125  ;;  %vm1016_vm14 = vcmp.lt.s32.totalorder %v2578_v17, 90  ;;  %vm1265_vm15 = vcmp.lt.s32.totalorder %v2578_v17, 7  ;;  %vm593_vm0 = vcmp.lt.s32.totalorder %v2578_v17, 113 }
 0x178   : > { %1321 = vrot.lane.b32.xlu1 %v2335_v52, %s3300_s21  ;;  %s2059_s21 = smov 121   ;;  %v2473_v21 = vpop.permute.xlu0 %929 }
 0x179   : > { %v2443_v12 = vpop.permute.xlu1 %552  ;;  %3352 = vst [vmem:[#allocation22_spill] sm:$0xff] %v2473_v21 }
 0x17c   : > { %649 = vrot.lane.b32.xlu1 %v2335_v52, %s2056_s11  ;;  %v2481_v23 = vpop.permute.xlu0 %1125 }
 0x17d   : > { %v2449_v14 = vpop.permute.xlu1 %1005  ;;  %3354 = vst [vmem:[#allocation23_spill] sm:$0xff] %v2481_v23 }
 0x180   : > { %906 = vrot.lane.b32.xlu1 %v2335_v52, %s2057_s25  ;;  %v2489_v26 = vpop.permute.xlu0 %1374 }
 0x181   : > { %v2457_v16 = vpop.permute.xlu1 %1254  ;;  %3355 = vst [vmem:[#allocation24_spill] sm:$0xff] %v2489_v26  ;;  %v704_v26 = vld [vmem:[#allocation5 + $0x11] ss:$8 sm:$0x3] }
 0x184   : > { %1102 = vrot.lane.b32.xlu1 %v2335_v52, %s2058_s14  ;;  %v2497_v28 = vpop.permute.xlu0 %1155 }
 0x185   : > { %v2463_v18 = vpop.permute.xlu1 %1314  ;;  %3358 = vst [vmem:[#allocation25_spill] sm:$0xff] %v2497_v28 }
 0x186   : > { %3349 = vst [vmem:[#allocation19_spill] sm:$0xff] %v2463_v18 }
 0x188   : > { %1351 = vrot.lane.b32.xlu1 %v2335_v52, %s2059_s21  ;;  %v2505_v31 = vpop.permute.xlu0 %1397 }
 0x189   : > { %v2471_v20 = vpop.permute.xlu1 %642  ;;  %3360 = vst [vmem:[#allocation26_spill] sm:$0xff] %v2505_v31  ;;  %v450_v31 = vshrl.u32 %v442_v53, 7 }
 0x18a   : > { %3351 = vst [vmem:[#allocation21_spill] sm:$0xff] %v2471_v20  ;;  %v694_v20 = vmul.f32 %v2390_v61, %v2335_v52 }
 0x18b   : > { %v2580_v28 = vsub.s32 0, %v450_v31  ;;  %v2582_v23 = vsub.s32 1, %v450_v31 }
 0x18c   : > { %698 = vrot.lane.b32.xlu1 %v2360_v55, %s2032_s10  ;;  %s3353_s10 = smov 96   ;;  %v2513_v33 = vpop.permute.xlu0 %681 }
 0x18d   : > { %3363 = vst [vmem:[#allocation27_spill] sm:$0xff] %v2513_v33 }
 0x190   : > { %728 = vrot.lane.b32.xlu1 %v2360_v55, %s2034_s16  ;;  %s2060_s16 = smov 32   ;;  %v2521_v36 = vpop.permute.xlu0 %492 }
 0x194   : > { %501 = vrot.lane.b32.xlu1 %v2360_v55, %s2036_s13  ;;  %s3357_s13 = smov 90   ;;  %v2529_v38 = vpop.permute.xlu0 %937 }
 0x195   : > { %3367 = vst [vmem:[#allocation28_spill] sm:$0xff] %v2529_v38  ;;  %v709_v38 = vrot.slane %v704_v26, %v2580_v28 }
 0x198   : > { %758 = vrot.lane.b32.xlu1 %v2360_v55, %s2037_s20  ;;  %s3359_s20 = smov 7   ;;  %v2537_v41 = vpop.permute.xlu0 %1185 }
 0x199   : > { %3369 = vst [vmem:[#allocation29_spill] sm:$0xff] %v2537_v41 }
 0x19c   : > { %954 = vrot.lane.b32.xlu1 %v2360_v55, %s2039_s18  ;;  %s3361_s18 = smov 113  }
 0x1a0   : > { %1210 = vrot.lane.b32.xlu1 %v2360_v55, %s2041_s17  ;;  %s3364_s17 = smov 6  }
 0x1a4   : > { %531 = vrot.lane.b32.xlu1 %v2360_v55, %s2043_s15  ;;  %s3356_s15 = smov 125  }
 0x1a8   : > { %788 = vrot.lane.b32.xlu1 %v2360_v55, %s2044_s22  ;;  %s3362_s22 = smov 83  }
 0x1aa   : > { %v2477_v22 = vpop.permute.xlu1 %438  ;;  %v697_v43 = vpop.permute.xlu0 %696 }
 0x1ac   : > { %984 = vrot.lane.b32.xlu1 %v2360_v55, %s3353_s10  ;;  %s3365_s10 = smov 9  }
 0x1ae   : > { %v2483_v24 = vpop.permute.xlu1 %469  ;;  %v727_v46 = vpop.permute.xlu0 %726 }
 0x1b0   : > { %1132 = vrot.lane.b32.xlu1 %v2335_v52, %s2060_s16 }
 0x1b2   : > { %v2487_v25 = vpop.permute.xlu1 %756  ;;  %v2557_v48 = vpop.permute.xlu0 %499 }
 0x1b4   : > { %818 = vrot.lane.b32.xlu1 %v2360_v55, %s3356_s15  ;;  %s3366_s15 = smov 112  }
 0x1b6   : > { %v2493_v27 = vpop.permute.xlu1 %952  ;;  %v2565_v51 = vpop.permute.xlu0 %816 }
 0x1b8   : > { %1014 = vrot.lane.b32.xlu1 %v2360_v55, %s3357_s13  ;;  %s3368_s13 = smov 80  }
 0x1ba   : > { %v2499_v29 = vpop.permute.xlu1 %1208  ;;  %v2573_v0 = vpop.permute.xlu0 %876 }
 0x1bb   : > { %3378 = vst [vmem:[#allocation35_spill] sm:$0xff] %v2573_v0 }
 0x1bc   : > { %1263 = vrot.lane.b32.xlu1 %v2360_v55, %s3359_s20  ;;  %s3370_s20 = smov 122  }
 0x1be   : > { %v2503_v30 = vpop.permute.xlu1 %529  ;;  %v2586_v18 = vpop.permute.xlu0 %1072 }
 0x1bf   : > { %3381 = vst [vmem:[#allocation38_spill] sm:$0xff] %v2586_v18 }
 0x1c0   : > { %591 = vrot.lane.b32.xlu1 %v2360_v55, %s3361_s18  ;;  %s3371_s18 = smov 119  }
 0x1c2   : > { %v2509_v32 = vpop.permute.xlu1 %786  ;;  %v441_v19 = vpop.permute.xlu0 %440 }
 0x1c4   : > { %848 = vrot.lane.b32.xlu1 %v2360_v55, %s3362_s22  ;;  %s1559_s22 = scalar_lea.sflag [#allocation4], %s2254_s26 }
 0x1c6   : > { %v2515_v34 = vpop.permute.xlu1 %982 }
 0x1c8   : > { %1044 = vrot.lane.b32.xlu1 %v2360_v55, %s3364_s17  ;;  %s2062_s17 = smov [#allocation7]  }
 0x1ca   : > { %v2519_v35 = vpop.permute.xlu1 %559 }
 0x1cc   : > { %1293 = vrot.lane.b32.xlu1 %v2360_v55, %s3365_s10  ;;  %s1923_s10 = sshll.u32 %s2062_s17, 4  ;;  %s1924_s10 = int_to_ptr.vmem [resolvable:$false] %s1923_s10 }
 0x1ce   : > { %v2525_v37 = vpop.permute.xlu1 %1012 }
 0x1d0   : > { %621 = vrot.lane.b32.xlu1 %v2360_v55, %s3366_s15  ;;  %s1925_s15 = scalar_lea.vmem %s1924_s10, 1024 }
 0x1d2   : > { %v2531_v39 = vpop.permute.xlu1 %1261 }
 0x1d4   : > { %878 = vrot.lane.b32.xlu1 %v2360_v55, %s3368_s13 }
 0x1d6   : > { %v2535_v40 = vpop.permute.xlu1 %589 }
 0x1d8   : > { %1074 = vrot.lane.b32.xlu1 %v2360_v55, %s3370_s20  ;;  %s3441_s20 = sshll.u32 %s2254_s26, 5 }
 0x1da   : > { %v2541_v42 = vpop.permute.xlu1 %846 }
 0x1dc   : > { %1323 = vrot.lane.b32.xlu1 %v2360_v55, %s3371_s18  ;;  %s338_s18 = scalar_lea.vmem [#allocation7], %s3441_s20 }
 0x1de   : > { %v2545_v44 = vpop.permute.xlu1 %1042 }
 0x1df   : > { %3372 = vst [vmem:[#allocation30_spill] sm:$0xff] %v2545_v44 }
 0x1e0   : > { %651 = vrot.lane.b32.xlu1 %v2360_v55, %s2056_s11  ;;  %s3377_s11 = smov 26  }
 0x1e2   : > { %v2549_v45 = vpop.permute.xlu1 %1291 }
 0x1e3   : > { %3373 = vst [vmem:[#allocation31_spill] sm:$0xff] %v2549_v45 }
 0x1e4   : > { %908 = vrot.lane.b32.xlu1 %v2360_v55, %s2057_s25 }
 0x1e6   : > { %v2553_v47 = vpop.permute.xlu1 %619 }
 0x1e8   : > { %1104 = vrot.lane.b32.xlu1 %v2360_v55, %s2058_s14  ;;  %s2061_s14 = smov 103  }
 0x1ea   : > { %v2559_v49 = vpop.permute.xlu1 %1321 }
 0x1eb   : > { %3374 = vst [vmem:[#allocation32_spill] sm:$0xff] %v2559_v49  ;;  %v713_v49 = vrot.slane %v704_v26, %v2582_v23 }
 0x1ec   : > { %1353 = vrot.lane.b32.xlu1 %v2360_v55, %s2059_s21 }
 0x1ee   : > { %v2563_v50 = vpop.permute.xlu1 %649 }
 0x1ef   : > { %3375 = vst [vmem:[#allocation33_spill] sm:$0xff] %v2563_v50 }
 0x1f0   : > { %1134 = vrot.lane.b32.xlu1 %v2360_v55, %s2060_s16 }
 0x1f2   : > { %v2569_v54 = vpop.permute.xlu1 %906 }
 0x1f3   : > { %3376 = vst [vmem:[#allocation34_spill] sm:$0xff] %v2569_v54 }
 0x1f4   : > { %1164 = vrot.lane.b32.xlu1 %v2360_v55, %s3377_s11  ;;  %s1572_s11 = sshll.u32 %s338_s18, 4  ;;  %s3219_s11 = int_to_ptr.vmem [resolvable:$true] %s1572_s11 }
 0x1f5   : > { %p1926_p10 = scmp.lt.s32.totalorder %s3219_s11, %s1924_s10 }
 0x1f6   : > { %v2575_v41 = vpop.permute.xlu1 %1102 }
 0x1f7   : > { %3379 = vst [vmem:[#allocation36_spill] sm:$0xff] %v2575_v41  ;;  %v734_v41 = vld [vmem:[#allocation5 + $0x12] ss:$8 sm:$0x3] }
 0x1f8   : > { %1404 = vrot.lane.b32.xlu1 %v2335_v52, %s2061_s14  ;;  %v743_v18 = vrot.slane %v734_v41, %v2582_v23 }
 0x1fa   : > { %v2584_v15 = vpop.permute.xlu1 %1351 }
 0x1fb   : > { %3380 = vst [vmem:[#allocation37_spill] sm:$0xff] %v2584_v15  ;;  %v739_v15 = vrot.slane %v734_v41, %v2580_v28  ;;  %v764_v41 = vld [vmem:[#allocation5 + $0x13] ss:$8 sm:$0x3] }
 0x1fc   : > { %1406 = vrot.lane.b32.xlu1 %v2360_v55, %s2061_s14  ;;  %s1675_s14 = sshll.u32 %s2130_s9, 9  ;;  %s1919_s9 = scalar_lea.vmem %s3219_s11, 512 }
 0x1fd   : > { %s3226_s16 = scalar_lea.hbm %s3279_s8, %s1675_s14  ;;  %p1920_p4 = scmp.ne.s32.totalorder %s3219_s11, %s1919_s9 }
 0x1fe   : > { %v699_v33 = vpop.permute.xlu1 %698  ;;  %p1927_p13 = scmp.lt.s32.totalorder %s1925_s15, %s1919_s9 }
 0x1ff   : > { %v701_v53 = vsel %vm700_vm1, %v697_v43, %v699_v33  ;;  %v702_v21 = vsel %vm700_vm1, %v699_v33, %v697_v43  ;;  %v695_v33 = vmul.f32 %v2390_v61, %v2360_v55  ;;  %vm850_vm1 = vcmp.lt.s32.totalorder %v2578_v17, 83  ;;  %p1921_p6 = pnand %p1920_p4, %p2203_p12 }
 0x200   : > { %v716_v31 = vmul.f32 %v709_v38, %v702_v21  ;;  %v717_v54 = vmul.f32 %v713_v49, %v701_v53  ;;  %v447_v21 = vld [vmem:[#allocation5] ss:$8 sm:$0x3]  ;;  %v477_v49 = vld [vmem:[#allocation5 + $0x1] ss:$8 sm:$0x3]  ;;  %p1928_p3 = por %p1927_p13, %p1926_p10 }
 0x201   : > { %v452_v61 = vrot.slane %v447_v21, %v2580_v28  ;;  %p1922_p8 = pneg %p1921_p6 }
 0x202   : > { %v722_v13 = vmul.f32 %v2400_v63, %v716_v31  ;;  %v723_v45 = vmul.f32 %v2400_v63, %v717_v54  ;;  %v729_v11 = vpop.permute.xlu1 %728 }
 0x203   : > { %v731_v50 = vsel %vm730_vm2, %v727_v46, %v729_v11  ;;  %v732_v26 = vsel %vm730_vm2, %v729_v11, %v727_v46  ;;  %v1446_v46 = vld [vmem:[%s3277_s6] sm:$0xff]  ;;  %vm623_vm2 = vcmp.lt.s32.totalorder %v2578_v17, 112  ;;  %p1929_p7 = pnand %p1928_p3, %p1922_p8 }
 0x204   : > { %v746_v38 = vmul.f32 %v739_v15, %v732_v26  ;;  %v747_v43 = vmul.f32 %v743_v18, %v731_v50  ;;  %v724_v53 = vadd.f32 %v722_v13, %v694_v20  ;;  %v725_v31 = vadd.f32 %v723_v45, %v695_v33  ;;  %v472_v18 = vpop.permute.xlu0 %471  ;;  %1450 = vperm.xlu1 %1855, %v1446_v46   ;;  %v1447_v50 = vld [vmem:[%s3277_s6 + $0x8] sm:$0xff] }
 0x205   : > { %v456_v15 = vrot.slane %v447_v21, %v2582_v23  ;;  %v769_v45 = vrot.slane %v764_v41, %v2580_v28  ;;  %v445_v26 = vsel %vm444_vm3, %v2477_v22, %v441_v19  ;;  %v446_v33 = vsel %vm444_vm3, %v441_v19, %v2477_v22 }
 0x206   : > { %v752_v63 = vmul.f32 %v2407_v3, %v746_v38  ;;  %v753_v54 = vmul.f32 %v2407_v3, %v747_v43  ;;  %v502_v11 = vpop.permute.xlu1 %501  ;;  %v773_v3 = vrot.slane %v764_v41, %v2582_v23  ;;  %v482_v21 = vrot.slane %v477_v49, %v2580_v28 }
 0x207   : > { %v486_v38 = vrot.slane %v477_v49, %v2582_v23  ;;  %v2625_v43 = vsel %vm473_vm4, %v2483_v24, %v472_v18  ;;  %v2628_v41 = vsel %vm473_vm4, %v472_v18, %v2483_v24  ;;  %v459_v22 = vmul.f32 %v452_v61, %v446_v33 }
 0x208   : > { %v754_v13 = vadd.f32 %v752_v63, %v724_v53  ;;  %v755_v20 = vadd.f32 %v753_v54, %v725_v31  ;;  %v507_v53 = vld [vmem:[#allocation5 + $0x2] ss:$8 sm:$0x3]  ;;  %1455 = vperm.xlu1 %1855, %v1447_v50   ;;  %v460_v49 = vmul.f32 %v456_v15, %v445_v26  ;;  %v489_v24 = vmul.f32 %v482_v21, %v2628_v41 }
 0x209   : > { %v490_v18 = vmul.f32 %v486_v38, %v2625_v43  ;;  %v512_v9 = vrot.slane %v507_v53, %v2580_v28  ;;  %v516_v0 = vrot.slane %v507_v53, %v2582_v23  ;;  %v504_v44 = vsel %vm503_vm6, %v2557_v48, %v502_v11 }
 0x20a   : > { %v759_v31 = vpop.permute.xlu1 %758  ;;  %v505_v7 = vsel %vm503_vm6, %v502_v11, %v2557_v48  ;;  %v465_v15 = vmul.f32 %v2380_v59, %v459_v22  ;;  %v436_v33 = vmul.f32 %v2362_v56, %v2335_v52  ;;  %v537_v48 = vld [vmem:[#allocation5 + $0x3] ss:$8 sm:$0x3]  ;;  %v437_v11 = vmul.f32 %v2362_v56, %v2360_v55 }
 0x20b   : > { %v761_v63 = vsel %vm760_vm5, %v2487_v25, %v759_v31  ;;  %v762_v19 = vsel %vm760_vm5, %v759_v31, %v2487_v25  ;;  %v519_v21 = vmul.f32 %v512_v9, %v505_v7  ;;  %v520_v38 = vmul.f32 %v516_v0, %v504_v44  ;;  %v562_v31 = vpop.permute.xlu0 %561  ;;  %v960_v0 = vld [vmem:[#allocation5 + $0x22] ss:$8 sm:$0x3] }
 0x20c   : > { %v776_v54 = vmul.f32 %v769_v45, %v762_v19  ;;  %v777_v46 = vmul.f32 %v773_v3, %v761_v63  ;;  %v466_v45 = vmul.f32 %v2380_v59, %v460_v49  ;;  %v567_v3 = vld [vmem:[#allocation5 + $0x5] ss:$8 sm:$0x3]  ;;  %v496_v53 = vmul.f32 %v2521_v36, %v490_v18 }
 0x20d   : > { %v467_v7 = vadd.f32 %v465_v15, %v436_v33  ;;  %v542_v9 = vrot.slane %v537_v48, %v2580_v28  ;;  %v564_v44 = vsel %vm563_vm7, %v2519_v35, %v562_v31  ;;  %v525_v63 = vmul.f32 %v2415_v5, %v519_v21  ;;  %v990_v21 = vld [vmem:[#allocation5 + $0x23] ss:$8 sm:$0x3] }
 0x20e   : > { %v782_v6 = vmul.f32 %v2371_v57, %v776_v54  ;;  %v783_v25 = vmul.f32 %v2371_v57, %v777_v46  ;;  %v955_v61 = vpop.permute.xlu1 %954  ;;  %v495_v57 = vmul.f32 %v2521_v36, %v489_v24  ;;  %v468_v56 = vadd.f32 %v466_v45, %v437_v11 }
 0x20f   : > { %v546_v36 = vrot.slane %v537_v48, %v2582_v23  ;;  %v526_v19 = vmul.f32 %v2415_v5, %v520_v38  ;;  %v965_v54 = vrot.slane %v960_v0, %v2580_v28  ;;  %v969_v46 = vrot.slane %v960_v0, %v2582_v23 }
 0x210   : > { %v2647_v50 = vadd.f32 %v782_v6, %v754_v13  ;;  %v2649_v26 = vadd.f32 %v783_v25, %v755_v20  ;;  %v572_v6 = vrot.slane %v567_v3, %v2580_v28  ;;  %v576_v13 = vrot.slane %v567_v3, %v2582_v23 }
 0x211   : > { %v565_v20 = vsel %vm563_vm7, %v562_v31, %v2519_v35  ;;  %v497_v22 = vadd.f32 %v495_v57, %v467_v7  ;;  %v498_v49 = vadd.f32 %v496_v53, %v468_v56  ;;  %v957_v18 = vsel %vm956_vm8, %v2493_v27, %v955_v61 }
 0x212   : > { %v2658_v59 = vpop.permute.xlu1 %1210  ;;  %v958_v25 = vsel %vm956_vm8, %v955_v61, %v2493_v27  ;;  %v579_v15 = vmul.f32 %v572_v6, %v564_v44  ;;  %v580_v45 = vmul.f32 %v576_v13, %v565_v20  ;;  %v973_v57 = vmul.f32 %v969_v46, %v957_v18 }
 0x213   : > { %v527_v38 = vadd.f32 %v525_v63, %v497_v22  ;;  %v528_v48 = vadd.f32 %v526_v19, %v498_v49  ;;  %v972_v11 = vmul.f32 %v965_v54, %v958_v25  ;;  %v995_v31 = vrot.slane %v990_v21, %v2580_v28 }
 0x214   : > { %v585_v6 = vmul.f32 %v2394_v62, %v579_v15  ;;  %v586_v13 = vmul.f32 %v2394_v62, %v580_v45  ;;  %v950_v19 = vmul.f32 %v2421_v1, %v2335_v52  ;;  %v951_v62 = vmul.f32 %v2421_v1, %v2360_v55  ;;  %v1239_v45 = vld [vmem:[#allocation5 + $0x34] ss:$8 sm:$0x3] }
 0x215   : > { %v978_v56 = vmul.f32 %v2429_v8, %v972_v11  ;;  %v1244_v11 = vrot.slane %v1239_v45, %v2580_v28  ;;  %vm1046_vm3 = vcmp.lt.s32.totalorder %v2578_v17, 6  ;;  %vm880_vm4 = vcmp.lt.s32.totalorder %v2578_v17, 80 }
 0x216   : > { %v532_v24 = vpop.permute.xlu1 %531  ;;  %vm653_vm5 = vcmp.lt.s32.totalorder %v2578_v17, 111  ;;  %vm1295_vm6 = vcmp.lt.s32.totalorder %v2578_v17, 9  ;;  %vm910_vm7 = vcmp.lt.s32.totalorder %v2578_v17, 77  ;;  %vm1076_vm8 = vcmp.lt.s32.totalorder %v2578_v17, 122 }
 0x217   : > { %v534_v35 = vsel %vm533_vm9, %v2503_v30, %v532_v24  ;;  %v535_v5 = vsel %vm533_vm9, %v532_v24, %v2503_v30  ;;  %v999_v30 = vrot.slane %v990_v21, %v2582_v23  ;;  %v980_v54 = vadd.f32 %v978_v56, %v950_v19  ;;  %v2728_v21 = vld [vmem:[#allocation5 + $0x16] ss:$8 sm:$0x3]  ;;  %v2817_v19 = vld [vmem:[#allocation5 + $0x40] ss:$8 sm:$0x3] }
 0x218   : > { %v549_v3 = vmul.f32 %v542_v9, %v535_v5  ;;  %v550_v33 = vmul.f32 %v546_v36, %v534_v35  ;;  %v979_v9 = vmul.f32 %v2429_v8, %v973_v57  ;;  %v1248_v57 = vrot.slane %v1239_v45, %v2582_v23  ;;  %v2791_v45 = vld [vmem:[#allocation5 + $0x42] ss:$8 sm:$0x3]  ;;  %v2845_v56 = vld [vmem:[#allocation5 + $0x41] ss:$8 sm:$0x3] }
 0x219   : > { %vm1106_vm9 = vcmp.lt.s32.totalorder %v2578_v17, 38 }
 0x21a   : > { %v555_v53 = vmul.f32 %v2443_v12, %v549_v3  ;;  %v556_v27 = vmul.f32 %v2443_v12, %v550_v33  ;;  %v2686_v61 = vpop.permute.xlu1 %788  ;;  %v981_v46 = vadd.f32 %v979_v9, %v951_v62  ;;  %v1216_v3 = vld [vmem:[#allocation5 + $0x33] ss:$8 sm:$0x3]  ;;  %v2722_v33 = vld [vmem:[#allocation5 + $0x14] ss:$8 sm:$0x3] }
 0x21b   : > { %v2764_v9 = vld [vmem:[#allocation5 + $0x25] ss:$8 sm:$0x3]  ;;  %v2775_v62 = vld [vmem:[#allocation5 + $0x36] ss:$8 sm:$0x3] }
 0x21c   : > { %v557_v0 = vadd.f32 %v555_v53, %v527_v38  ;;  %v558_v7 = vadd.f32 %v556_v27, %v528_v48  ;;  %v2730_v38 = vld [vmem:[#allocation5 + $0x24] ss:$8 sm:$0x3]  ;;  %v2734_v48 = vmul.f32 %v2375_v58, %v2360_v55  ;;  %v1221_v53 = vrot.slane %v1216_v3, %v2580_v28  ;;  %v2739_v27 = vld [vmem:[#allocation5 + $0x35] ss:$8 sm:$0x3] }
 0x21d   : > { %v799_v55 = vrot.slane %v2722_v33, %v2580_v28 }
 0x21e   : > { %v985_v36 = vpop.permute.xlu1 %984  ;;  %v2695_v12 = vadd.f32 %v586_v13, %v558_v7  ;;  %v2697_v44 = vadd.f32 %v585_v6, %v557_v0  ;;  %v2751_v6 = vld [vmem:[#allocation5 + $0x17] ss:$8 sm:$0x3]  ;;  %v1214_v13 = vsel %vm1212_vm11, %v2658_v59, %v2499_v29  ;;  %v829_v0 = vrot.slane %v2728_v21, %v2580_v28  ;;  %v2863_v7 = vld [vmem:[#allocation5 + $0x31] ss:$8 sm:$0x3] }
 0x21f   : > { %v987_v20 = vsel %vm986_vm10, %v2515_v34, %v985_v36  ;;  %v988_v63 = vsel %vm986_vm10, %v985_v36, %v2515_v34  ;;  %v2843_v36 = vld [vmem:[#allocation5 + $0x30] ss:$8 sm:$0x3]  ;;  %vm1325_vm10 = vcmp.lt.s32.totalorder %v2578_v17, 119 }
 0x220   : > { %v1002_v22 = vmul.f32 %v995_v31, %v988_v63  ;;  %v1003_v49 = vmul.f32 %v999_v30, %v987_v20  ;;  %v2741_v31 = vld [vmem:[#allocation5 + $0x6] ss:$8 sm:$0x3]  ;;  %v1225_v30 = vrot.slane %v1216_v3, %v2582_v23  ;;  %v1252_v3 = vmul.f32 %v1248_v57, %v2628_v41 }
 0x221   : > { %v791_v63 = vsel %vm790_vm12, %v2509_v32, %v2686_v61 }
 0x222   : > { %v1008_v8 = vmul.f32 %v2449_v14, %v1002_v22  ;;  %v1009_v24 = vmul.f32 %v2449_v14, %v1003_v49  ;;  %v2707_v18 = vpop.permute.xlu1 %1132  ;;  %v2726_v14 = vmul.f32 %v2375_v58, %v2335_v52  ;;  %v803_v58 = vrot.slane %v2722_v33, %v2582_v23  ;;  %v2777_v22 = vld [vmem:[#allocation5 + $0x7] ss:$8 sm:$0x3] }
 0x223   : > { %v1251_v49 = vmul.f32 %v1244_v11, %v2625_v43  ;;  %v1229_v43 = vmul.f32 %v1225_v30, %v1214_v13  ;;  %v2799_v11 = vld [vmem:[#allocation5 + $0x20] ss:$8 sm:$0x3]  ;;  %v2809_v30 = vld [vmem:[#allocation5 + $0x27] ss:$8 sm:$0x3] }
 0x224   : > { %v2709_v25 = vadd.f32 %v1008_v8, %v980_v54  ;;  %v2711_v35 = vadd.f32 %v1009_v24, %v981_v46  ;;  %v1213_v54 = vsel %vm1212_vm11, %v2499_v29, %v2658_v59  ;;  %v2819_v46 = vld [vmem:[#allocation5 + $0x10] ss:$8 sm:$0x3]  ;;  %v2835_v59 = vld [vmem:[#allocation5 + $0x21] ss:$8 sm:$0x3] }
 0x225   : > { %v1228_v13 = vmul.f32 %v1221_v53, %v1213_v54  ;;  %v2822_v41 = vmul.f32 %v2457_v16, %v1251_v49  ;;  %v792_v53 = vsel %vm790_vm12, %v2686_v61, %v2509_v32  ;;  %v1258_v49 = vmul.f32 %v2457_v16, %v1252_v3 }
 0x226   : > { %v2713_v34 = vpop.permute.xlu1 %818  ;;  %v1235_v57 = vmul.f32 %v2435_v10, %v1229_v43  ;;  %v666_v43 = vrot.slane %v2819_v46, %v2582_v23  ;;  %v806_v8 = vmul.f32 %v799_v55, %v792_v53  ;;  %v919_v29 = vrot.slane %v2835_v59, %v2580_v28 }
 0x227   : > { %v1234_v20 = vmul.f32 %v2435_v10, %v1228_v13  ;;  %v821_v55 = vsel %vm820_vm13, %v2565_v51, %v2713_v34  ;;  %v822_v53 = vsel %vm820_vm13, %v2713_v34, %v2565_v51  ;;  %v807_v32 = vmul.f32 %v803_v58, %v791_v63  ;;  %v2897_v34 = vld [vmem:[#allocation5 + $0x32] ss:$8 sm:$0x3] }
 0x228   : > { %v1237_v61 = vadd.f32 %v1235_v57, %v2734_v48  ;;  %v812_v13 = vmul.f32 %v2382_v60, %v806_v8  ;;  %v836_v63 = vmul.f32 %v829_v0, %v821_v55  ;;  %v3382_v51 = vrot.slane %v2728_v21, %v2582_v23 }
 0x229   : > { %v1236_v10 = vadd.f32 %v1234_v20, %v2726_v14  ;;  %v3383_v8 = vrot.slane %v2730_v38, %v2580_v28  ;;  %v1175_v21 = vrot.slane %v2897_v34, %v2580_v28  ;;  %v1179_v55 = vrot.slane %v2897_v34, %v2582_v23 }
 0x22a   : > { %v2715_v5 = vpop.permute.xlu1 %1014  ;;  %v837_v14 = vmul.f32 %v3382_v51, %v822_v53  ;;  %v1260_v0 = vadd.f32 %v1258_v49, %v1237_v61  ;;  %v813_v53 = vmul.f32 %v2382_v60, %v807_v32  ;;  %v3385_v51 = vrot.slane %v2739_v27, %v2580_v28 }
 0x22b   : > { %v1018_v48 = vsel %vm1016_vm14, %v2715_v5, %v2525_v37  ;;  %v1017_v33 = vsel %vm1016_vm14, %v2525_v37, %v2715_v5  ;;  %v3386_v61 = vrot.slane %v2739_v27, %v2582_v23  ;;  %v3387_v60 = vrot.slane %v2741_v31, %v2580_v28 }
 0x22c   : > { %v1032_v57 = vmul.f32 %v3383_v8, %v1018_v48  ;;  %v843_v27 = vmul.f32 %v2402_v2, %v837_v14  ;;  %v3388_v8 = vrot.slane %v2741_v31, %v2582_v23  ;;  %v3390_v31 = vrot.slane %v2751_v6, %v2582_v23 }
 0x22d   : > { %vm1355_vm11 = vcmp.lt.s32.totalorder %v2578_v17, 121  ;;  %vm1136_vm12 = vcmp.lt.s32.totalorder %v2578_v17, 32  ;;  %vm1166_vm13 = vcmp.lt.s32.totalorder %v2578_v17, 26  ;;  %v3437_v34 = vrot.slane %v2791_v45, %v2580_v28 }
 0x22e   : > { %v2717_v15 = vpop.permute.xlu1 %1263  ;;  %vm1408_vm14 = vcmp.lt.s32.totalorder %v2578_v17, 103 }
 0x22f   : > { %v1266_v58 = vsel %vm1265_vm15, %v2531_v39, %v2717_v15  ;;  %v1267_v20 = vsel %vm1265_vm15, %v2717_v15, %v2531_v39  ;;  %v3384_v39 = vrot.slane %v2730_v38, %v2582_v23  ;;  %vm1458_vm15 = vcmask 261120  }
 0x230   : > { %v1281_v3 = vmul.f32 %v3385_v51, %v1266_v58  ;;  %v1282_v48 = vmul.f32 %v3386_v61, %v1267_v20  ;;  %v1259_v58 = vadd.f32 %v2822_v41, %v1236_v10  ;;  %v3389_v41 = vrot.slane %v2751_v6, %v2580_v28 }
 0x231   : > { %v1033_v15 = vmul.f32 %v3384_v39, %v1017_v33  ;;  %v842_v33 = vmul.f32 %v2402_v2, %v836_v63  ;;  %v3394_v6 = vrot.slane %v2777_v22, %v2580_v28 }
 0x232   : > { %v2719_v1 = vpop.permute.xlu1 %591 }
 0x233   : > { %v594_v37 = vsel %vm593_vm0, %v2535_v40, %v2719_v1  ;;  %v595_v49 = vsel %vm593_vm0, %v2719_v1, %v2535_v40  ;;  %v814_v1 = vadd.f32 %v812_v13, %v2647_v50  ;;  %v815_v50 = vadd.f32 %v813_v53, %v2649_v26  ;;  %v3393_v26 = vld [vmem:[#allocation30_spill] sm:$0xff] }
 0x234   : > { %v609_v38 = vmul.f32 %v3387_v60, %v594_v37  ;;  %v1038_v37 = vmul.f32 %v2411_v4, %v1032_v57  ;;  %v610_v39 = vmul.f32 %v3388_v8, %v595_v49  ;;  %v3391_v57 = vld [vmem:[#allocation12_spill] sm:$0xff]  ;;  %v3396_v49 = vld [vmem:[#allocation35_spill] sm:$0xff] }
 0x235   : > { %v1287_v63 = vmul.f32 %v3391_v57, %v1281_v3  ;;  %v1288_v14 = vmul.f32 %v3391_v57, %v1282_v48  ;;  %v3395_v3 = vrot.slane %v2777_v22, %v2582_v23  ;;  %v844_v60 = vadd.f32 %v842_v33, %v814_v1  ;;  %v3397_v22 = vld [vmem:[#allocation14_spill] sm:$0xff] }
 0x236   : > { %v2743_v52 = vpop.permute.xlu1 %848 }
 0x237   : > { %v851_v32 = vsel %vm850_vm1, %v2541_v42, %v2743_v52  ;;  %v852_v40 = vsel %vm850_vm1, %v2743_v52, %v2541_v42  ;;  %v1039_v52 = vmul.f32 %v2411_v4, %v1033_v15  ;;  %v3024_v1 = vadd.f32 %v1287_v63, %v1259_v58  ;;  %v3401_v58 = vld [vmem:[#allocation21_spill] sm:$0xff] }
 0x238   : > { %v866_v10 = vmul.f32 %v3389_v41, %v851_v32  ;;  %v867_v13 = vmul.f32 %v3390_v31, %v852_v40 }
 0x239   : > { %v3016_v40 = vadd.f32 %v1039_v52, %v2711_v35  ;;  %v3399_v35 = vrot.slane %v2764_v9, %v2582_v23 }
 0x23a   : > { %v2789_v24 = vpop.permute.xlu1 %1044  ;;  %v872_v8 = vmul.f32 %v3397_v22, %v866_v10  ;;  %v873_v41 = vmul.f32 %v3397_v22, %v867_v13 }
 0x23b   : > { %v1047_v4 = vsel %vm1046_vm3, %v3393_v26, %v2789_v24  ;;  %v1048_v53 = vsel %vm1046_vm3, %v2789_v24, %v3393_v26  ;;  %v845_v24 = vadd.f32 %v843_v27, %v815_v50  ;;  %v3036_v50 = vadd.f32 %v1288_v14, %v1260_v0 }
 0x23c   : > { %v1063_v27 = vmul.f32 %v3399_v35, %v1047_v4  ;;  %v3410_v35 = vrot.slane %v2835_v59, %v2582_v23  ;;  %v3413_v59 = vld [vmem:[#allocation22_spill] sm:$0xff] }
 0x23d   : > { %v875_v14 = vadd.f32 %v873_v41, %v845_v24  ;;  %v3408_v24 = vld [vmem:[#allocation20_spill] sm:$0xff]  ;;  %v3409_v41 = vld [vmem:[#allocation34_spill] sm:$0xff] }
 0x23e   : > { %v2829_v54 = vpop.permute.xlu1 %1293 }
 0x242   : > { %v622_v16 = vpop.permute.xlu1 %621 }
 0x243   : > { %v2970_v42 = vsel %vm623_vm2, %v2553_v47, %v622_v16  ;;  %v2975_v2 = vsel %vm623_vm2, %v622_v16, %v2553_v47  ;;  %v3392_v47 = vld [vmem:[#allocation13_spill] sm:$0xff] }
 0x244   : > { %v615_v16 = vmul.f32 %v3392_v47, %v609_v38  ;;  %v639_v15 = vmul.f32 %v3394_v6, %v2970_v42  ;;  %v640_v51 = vmul.f32 %v3395_v3, %v2975_v2  ;;  %v3012_v38 = vadd.f32 %v1038_v37, %v2709_v25 }
 0x245   : > { %v616_v32 = vmul.f32 %v3392_v47, %v610_v39  ;;  %v3398_v25 = vrot.slane %v2764_v9, %v2580_v28  ;;  %v3400_v37 = vrot.slane %v2799_v11, %v2582_v23  ;;  %v3402_v9 = vrot.slane %v2799_v11, %v2580_v28  ;;  %v3403_v47 = vld [vmem:[#allocation33_spill] sm:$0xff]  ;;  %v3405_v11 = vld [vmem:[#allocation15_spill] sm:$0xff] }
 0x246   : > { %v879_v5 = vpop.permute.xlu1 %878  ;;  %v645_v52 = vmul.f32 %v3401_v58, %v639_v15  ;;  %v646_v10 = vmul.f32 %v3401_v58, %v640_v51  ;;  %v1069_v6 = vmul.f32 %v3405_v11, %v1063_v27  ;;  %v3406_v15 = vld [vmem:[#allocation31_spill] sm:$0xff]  ;;  %v3407_v51 = vld [vmem:[#allocation16_spill] sm:$0xff] }
 0x247   : > { %v882_v61 = vsel %vm880_vm4, %v879_v5, %v3396_v49  ;;  %v881_v31 = vsel %vm880_vm4, %v3396_v49, %v879_v5  ;;  %v1062_v33 = vmul.f32 %v3398_v25, %v1048_v53  ;;  %v617_v5 = vadd.f32 %v615_v16, %v2697_v44 }
 0x248   : > { %v897_v39 = vmul.f32 %v3400_v37, %v882_v61  ;;  %v618_v57 = vadd.f32 %v616_v32, %v2695_v12  ;;  %v896_v63 = vmul.f32 %v3402_v9, %v881_v31  ;;  %v874_v44 = vadd.f32 %v872_v8, %v844_v60 }
 0x249   : > { %v3404_v16 = vrot.slane %v2819_v46, %v2580_v28  ;;  %v1068_v53 = vmul.f32 %v3405_v11, %v1062_v33  ;;  %v1297_v3 = vsel %vm1295_vm6, %v2829_v54, %v3406_v15  ;;  %v647_v61 = vadd.f32 %v645_v52, %v617_v5  ;;  %v3412_v52 = vld [vmem:[#allocation38_spill] sm:$0xff] }
 0x24a   : > { %v2961_v20 = vpop.permute.xlu1 %1074  ;;  %v903_v49 = vmul.f32 %v3407_v51, %v897_v39  ;;  %v648_v60 = vadd.f32 %v646_v10, %v618_v57  ;;  %v1296_v46 = vsel %vm1295_vm6, %v3406_v15, %v2829_v54  ;;  %v3411_v39 = vrot.slane %v2775_v62, %v2580_v28 }
 0x24b   : > { %v1077_v10 = vsel %vm1076_vm8, %v3412_v52, %v2961_v20  ;;  %v3417_v11 = vrot.slane %v2809_v30, %v2580_v28 }
 0x24c   : > { %v1311_v5 = vmul.f32 %v3411_v39, %v1297_v3  ;;  %v905_v58 = vadd.f32 %v903_v49, %v875_v14  ;;  %v3418_v3 = vrot.slane %v2809_v30, %v2582_v23  ;;  %v3421_v30 = vrot.slane %v2843_v36, %v2582_v23 }
 0x24d   : > { %v1092_v15 = vmul.f32 %v3417_v11, %v1077_v10 }
 0x24e   : > { %v3009_v48 = vpop.permute.xlu1 %1323 }
 0x252   : > { %v652_v13 = vpop.permute.xlu1 %651 }
 0x253   : > { %v654_v26 = vsel %vm653_vm5, %v3403_v47, %v652_v13  ;;  %v655_v0 = vsel %vm653_vm5, %v652_v13, %v3403_v47 }
 0x254   : > { %v669_v4 = vmul.f32 %v3404_v16, %v654_v26  ;;  %v670_v12 = vmul.f32 %v666_v43, %v655_v0  ;;  %v902_v43 = vmul.f32 %v3407_v51, %v896_v63  ;;  %v3414_v63 = vld [vmem:[#allocation27_spill] sm:$0xff]  ;;  %v3415_v0 = vrot.slane %v2775_v62, %v2582_v23  ;;  %v3419_v62 = vld [vmem:[#allocation32_spill] sm:$0xff] }
 0x256   : > { %v675_v32 = vmul.f32 %v3408_v24, %v669_v4  ;;  %v676_v22 = vmul.f32 %v3408_v24, %v670_v12  ;;  %v909_v8 = vpop.permute.xlu1 %908  ;;  %v1312_v14 = vmul.f32 %v3415_v0, %v1296_v46  ;;  %v904_v16 = vadd.f32 %v902_v43, %v874_v44  ;;  %v3416_v4 = vld [vmem:[#allocation36_spill] sm:$0xff] }
 0x257   : > { %v911_v31 = vsel %vm910_vm7, %v3409_v41, %v909_v8  ;;  %v912_v25 = vsel %vm910_vm7, %v909_v8, %v3409_v41  ;;  %v1326_v44 = vsel %vm1325_vm10, %v3419_v62, %v3009_v48  ;;  %v1070_v8 = vadd.f32 %v1068_v53, %v3012_v38  ;;  %v3422_v41 = vld [vmem:[#allocation28_spill] sm:$0xff] }
 0x258   : > { %v926_v33 = vmul.f32 %v919_v29, %v911_v31  ;;  %v927_v54 = vmul.f32 %v3410_v35, %v912_v25  ;;  %v678_v27 = vadd.f32 %v676_v22, %v648_v60  ;;  %v677_v37 = vadd.f32 %v675_v32, %v647_v61  ;;  %v3423_v35 = vld [vmem:[#allocation19_spill] sm:$0xff] }
 0x259   : > { %v1078_v29 = vsel %vm1076_vm8, %v2961_v20, %v3412_v52  ;;  %v1327_v61 = vsel %vm1325_vm10, %v3009_v48, %v3419_v62  ;;  %v3420_v60 = vrot.slane %v2843_v36, %v2580_v28  ;;  %v1317_v48 = vmul.f32 %v3423_v35, %v1311_v5  ;;  %v3424_v36 = vld [vmem:[#allocation17_spill] sm:$0xff] }
 0x25a   : > { %v932_v13 = vmul.f32 %v3413_v59, %v926_v33  ;;  %v933_v57 = vmul.f32 %v3413_v59, %v927_v54  ;;  %v1105_v9 = vpop.permute.xlu1 %1104  ;;  %v685_v47 = vadd.f32 %v3414_v63, %v678_v27  ;;  %v684_v26 = vadd.f32 %v3414_v63, %v677_v37  ;;  %v3136_v37 = vpop.permute.xlu0 %1427 }
 0x25b   : > { %v1107_v12 = vsel %vm1106_vm9, %v3416_v4, %v1105_v9  ;;  %v1108_v20 = vsel %vm1106_vm9, %v1105_v9, %v3416_v4  ;;  %v1093_v51 = vmul.f32 %v3418_v3, %v1078_v29  ;;  %v1071_v33 = vadd.f32 %v1069_v6, %v3016_v40  ;;  %v3427_v6 = vld [vmem:[#allocation23_spill] sm:$0xff] }
 0x25c   : > { %v935_v49 = vadd.f32 %v933_v57, %v905_v58  ;;  %v1122_v24 = vmul.f32 %v3420_v60, %v1107_v12  ;;  %v1123_v32 = vmul.f32 %v3421_v30, %v1108_v20  ;;  %v934_v22 = vadd.f32 %v932_v13, %v904_v16  ;;  %v3428_v13 = vld [vmem:[#allocation37_spill] sm:$0xff] }
 0x25d   : > { %v687_v43 = vmax.f32 %v685_v47, 0.0  ;;  %v686_v25 = vmax.f32 %v684_v26, 0.0  ;;  %v1318_v54 = vmul.f32 %v3423_v35, %v1312_v14  ;;  %v1098_v39 = vmul.f32 %v3424_v36, %v1092_v15 }
 0x25e   : > { %v1354_v46 = vpop.permute.xlu1 %1353  ;;  %v941_v31 = vadd.f32 %v3422_v41, %v935_v49  ;;  %v940_v27 = vadd.f32 %v3422_v41, %v934_v22  ;;  %v1099_v58 = vmul.f32 %v3424_v36, %v1093_v51  ;;  %v3425_v38 = vrot.slane %v2817_v19, %v2580_v28  ;;  %v1163_v60 = vpop.permute.xlu0 %1162 }
 0x25f   : > { %v3426_v52 = vrot.slane %v2817_v19, %v2582_v23  ;;  %v1128_v5 = vmul.f32 %v3427_v6, %v1122_v24  ;;  %v1129_v10 = vmul.f32 %v3427_v6, %v1123_v32  ;;  %v1356_v57 = vsel %vm1355_vm11, %v3428_v13, %v1354_v46  ;;  %v3433_v32 = vld [vmem:[#allocation25_spill] sm:$0xff] }
 0x260   : > { %v1341_v53 = vmul.f32 %v3425_v38, %v1326_v44  ;;  %v943_v29 = vmax.f32 %v941_v31, 0.0  ;;  %v942_v59 = vmax.f32 %v940_v27, 0.0  ;;  %v1357_v9 = vsel %vm1355_vm11, %v1354_v46, %v3428_v13 }
 0x261   : > { %v1342_v40 = vmul.f32 %v3426_v52, %v1327_v61  ;;  %v689_v47 = vmin.f32 %v687_v43, 6.0  ;;  %v688_v26 = vmin.f32 %v686_v25, 6.0  ;;  %v1100_v4 = vadd.f32 %v1098_v39, %v1070_v8  ;;  %v1412_v52 = vld [vmem:[#allocation5 + $0x43] ss:$8 sm:$0x3] }
 0x262   : > { %v1135_v63 = vpop.permute.xlu1 %1134  ;;  %v945_v14 = vmin.f32 %v943_v29, 6.0  ;;  %v944_v16 = vmin.f32 %v942_v59, 6.0  ;;  %v1101_v12 = vadd.f32 %v1099_v58, %v1071_v33  ;;  %v3429_v20 = vrot.slane %v2863_v7, %v2580_v28  ;;  %v3435_v58 = vld [vmem:[#allocation24_spill] sm:$0xff] }
 0x263   : > { %v1137_v19 = vsel %vm1136_vm12, %v2707_v18, %v1135_v63  ;;  %v1138_v0 = vsel %vm1136_vm12, %v1135_v63, %v2707_v18  ;;  %v3430_v15 = vrot.slane %v2863_v7, %v2582_v23  ;;  %v3431_v51 = vrot.slane %v2845_v56, %v2580_v28  ;;  %v3434_v7 = vld [vmem:[#allocation18_spill] sm:$0xff] }
 0x264   : > { %v1152_v11 = vmul.f32 %v3429_v20, %v1137_v19  ;;  %v3432_v44 = vrot.slane %v2845_v56, %v2582_v23  ;;  %v1680_v49 = vpack.c.bf16 %v945_v14, %v689_v47  ;;  %v1682_v61 = vpack.c.bf16 %v944_v16, %v688_v26  ;;  %v3439_v47 = vld [vmem:[#allocation26_spill] sm:$0xff]  ;;  %v1194_v19 = vpop.permute.xlu0 %1193 }
 0x265   : > { %v1153_v3 = vmul.f32 %v3430_v15, %v1138_v0  ;;  %v1371_v62 = vmul.f32 %v3431_v51, %v1357_v9  ;;  %v1130_v24 = vadd.f32 %v1128_v5, %v1100_v4  ;;  %v1131_v30 = vadd.f32 %v1129_v10, %v1101_v12 }
 0x266   : > { %v1372_v18 = vmul.f32 %v3432_v44, %v1356_v57  ;;  %v1158_v22 = vmul.f32 %v3433_v32, %v1152_v11  ;;  %v1165_v46 = vpop.permute.xlu1 %1164  ;;  %v1347_v43 = vmul.f32 %v3434_v7, %v1341_v53  ;;  %v1348_v41 = vmul.f32 %v3434_v7, %v1342_v40  ;;  %1681 = vmatprep.subr.bf16.mxu1 %v1680_v49  ;;  %v3436_v40 = vld [vmem:[#allocation29_spill] sm:$0xff] }
 0x267   : > { %v1159_v8 = vmul.f32 %v3433_v32, %v1153_v3  ;;  %v1167_v31 = vsel %vm1166_vm13, %v1163_v60, %v1165_v46  ;;  %v1168_v56 = vsel %vm1166_vm13, %v1165_v46, %v1163_v60  ;;  %1683 = vmatpush1.bf16.msra.mxu1 %v1682_v61  ;;  %v1319_v36 = vadd.f32 %v1317_v48, %v3024_v1  ;;  %v1445_v46 = vld [vmem:[%s3276_s5 + $0x8] sm:$0xff] }
 0x268   : > { %v1182_v25 = vmul.f32 %v1175_v21, %v1167_v31  ;;  %v1183_v33 = vmul.f32 %v1179_v55, %v1168_v56  ;;  %v1160_v35 = vadd.f32 %v1158_v22, %v1130_v24  ;;  %v1320_v39 = vadd.f32 %v1318_v54, %v3036_v50  ;;  %v1436_v20 = vpop.permute.xlu0 %1435 }
 0x269   : > { %v1161_v27 = vadd.f32 %v1159_v8, %v1131_v30  ;;  %v1377_v38 = vmul.f32 %v3435_v58, %v1371_v62  ;;  %v1378_v53 = vmul.f32 %v3435_v58, %v1372_v18  ;;  %v1394_v55 = vmul.f32 %v3437_v34, %v2975_v2 }
 0x26a   : > { %v1188_v6 = vmul.f32 %v3436_v40, %v1182_v25  ;;  %v1189_v21 = vmul.f32 %v3436_v40, %v1183_v33  ;;  %v1405_v5 = vpop.permute.xlu1 %1404  ;;  %v3438_v1 = vrot.slane %v2791_v45, %v2582_v23  ;;  %v1349_v48 = vadd.f32 %v1347_v43, %v1319_v36 }
 0x26b   : > { %v1350_v54 = vadd.f32 %v1348_v41, %v1320_v39  ;;  %v1417_v10 = vrot.slane %v1412_v52, %v2580_v28  ;;  %v1421_v29 = vrot.slane %v1412_v52, %v2582_v23  ;;  %v1400_v2 = vmul.f32 %v3439_v47, %v1394_v55  ;;  %v1857_v52 = vld [vmem:[%s2260_s19] sm:$0xff] }
 0x26c   : > { %v1395_v50 = vmul.f32 %v3438_v1, %v2970_v42  ;;  %v1379_v59 = vadd.f32 %v1377_v38, %v1349_v48  ;;  %v1190_v57 = vadd.f32 %v1188_v6, %v1160_v35  ;;  %v1191_v9 = vadd.f32 %v1189_v21, %v1161_v27  ;;  %v1858_v21 = vld [vmem:[%s2260_s19 + $0x8] sm:$0xff] }
 0x26d   : > { %v1380_v13 = vadd.f32 %v1378_v53, %v1350_v54  ;;  %v3440_v8 = vmov 0.0   ;;  %v1860_v54 = vld [vmem:[%s2260_s19 + $0x18] sm:$0xff] }
 0x26e   : > { %v1407_v63 = vpop.permute.xlu1 %1406  ;;  %v1401_v26 = vmul.f32 %v3439_v47, %v1395_v50  ;;  %v1402_v16 = vadd.f32 %v1400_v2, %v1379_v59  ;;  %v1196_v4 = vadd.f32 %v1194_v19, %v1190_v57  ;;  %v1197_v28 = vadd.f32 %v1194_v19, %v1191_v9  ;;  %v1859_v50 = vld [vmem:[%s2260_s19 + $0x10] sm:$0xff] }
 0x26f   : > { %v1409_v45 = vsel %vm1408_vm14, %v1405_v5, %v1407_v63  ;;  %v1410_v42 = vsel %vm1408_vm14, %v1407_v63, %v1405_v5 }
 0x270   : > { %v1424_v0 = vmul.f32 %v1417_v10, %v1410_v42  ;;  %v1425_v14 = vmul.f32 %v1421_v29, %v1409_v45  ;;  %v1403_v17 = vadd.f32 %v1401_v26, %v1380_v13  ;;  %v1198_v3 = vmax.f32 %v1196_v4, 0.0 }
 0x271   : > { %v1199_v51 = vmax.f32 %v1197_v28, 0.0 }
 0x272   : > { %v1430_v23 = vmul.f32 %v3136_v37, %v1424_v0  ;;  %v1431_v12 = vmul.f32 %v3136_v37, %v1425_v14  ;;  %v1200_v61 = vmin.f32 %v1198_v3, 6.0  ;;  %v1444_v37 = vld [vmem:[%s3276_s5] sm:$0xff] }
 0x273   : > { %v1201_v60 = vmin.f32 %v1199_v51, 6.0 }
 0x274   : > { %v1432_v11 = vadd.f32 %v1430_v23, %v1402_v16  ;;  %v1433_v15 = vadd.f32 %v1431_v12, %v1403_v17 }
 0x276   : > { %v1438_v62 = vadd.f32 %v1436_v20, %v1432_v11  ;;  %v1439_v44 = vadd.f32 %v1436_v20, %v1433_v15 }
 0x278   : > { %v1440_v18 = vmax.f32 %v1438_v62, 0.0  ;;  %v1441_v49 = vmax.f32 %v1439_v44, 0.0 }
 0x27a   : > { %v1442_v24 = vmin.f32 %v1440_v18, 6.0  ;;  %v1443_v30 = vmin.f32 %v1441_v49, 6.0 }
 0x27c   : > { %v1684_v32 = vpack.c.bf16 %v1443_v30, %v1201_v60  ;;  %v1686_v22 = vpack.c.bf16 %v1442_v24, %v1200_v61 }
 0x27e   : > { %1685 = vmatprep.subr.bf16.mxu1 %v1684_v32 }
 0x27f   : > { %1687 = vmatpush1.bf16.msra.mxu1 %v1686_v22 }
 0x282   : > { %1667 = vmatmul.mubr.msk.f32.vlgmr.msra.gmra.mrb[0].mxu1 %vm1458_vm15, %v1444_v37 }
 0x283   : > { %1535 = vmatprep.mubr.f32.mxu1 %v3440_v8  ;;  %v1451_v7 = vpop.permute.xlu1 %1450 }
 0x286   : > { %1668 = vmatmul.mubr.msk.f32.gmra.mrb[2].mxu1 %vm1458_vm15, %v1445_v46 }
 0x287   : > { %v1456_v33 = vpop.permute.xlu1 %1455 }
 0x355   : > { %v1531_v43 = vpop.f32.mrb[0].mxu1 }
 0x356   : > { %v1532_v41 = vadd.f32 %v1531_v43, %v1451_v7  ;;  %v1533_v31 = vpop.f32.mrb[1].mxu1 }
 0x357   : > { %v1534_v56 = vadd.f32 %v1533_v31, %v1451_v7 }
 0x358   : > { %v1542_v25 = vmax.f32 %v1532_v41, 0.0 }
 0x359   : > { %v1543_v35 = vmax.f32 %v1534_v56, 0.0  ;;  %v1537_v27 = vpop.f32.mrb[2].mxu1 }
 0x35a   : > { %v1546_v36 = vmin.f32 %v1542_v25, 6.0  ;;  %v1538_v39 = vadd.f32 %v1537_v27, %v1456_v33  ;;  %v1539_v58 = vpop.f32.mrb[3].mxu1 }
 0x35b   : > { %v1547_v38 = vmin.f32 %v1543_v35, 6.0  ;;  %v1540_v53 = vadd.f32 %v1539_v58, %v1456_v33 }
 0x35c   : > { %v1550_v40 = vadd.f32 %v1857_v52, %v1546_v36  ;;  %v1544_v6 = vmax.f32 %v1538_v39, 0.0 }
 0x35d   : > { %v1551_v5 = vadd.f32 %v1858_v21, %v1547_v38  ;;  %v1545_v34 = vmax.f32 %v1540_v53, 0.0 }
 0x35e   : > { %1554 = vst [vmem:[%s338_s18] sm:$0xff] %v1550_v40  ;;  %v1548_v55 = vmin.f32 %v1544_v6, 6.0 }
 0x35f   : > { %1555 = vst [vmem:[%s338_s18 + $0x8] sm:$0xff] %v1551_v5  ;;  %v1549_v1 = vmin.f32 %v1545_v34, 6.0 }
 0x360   : > { %v1552_v48 = vadd.f32 %v1859_v50, %v1548_v55 }
 0x361   : > { %v1553_v10 = vadd.f32 %v1860_v54, %v1549_v1 }
 0x362   : > { %1556 = vst [vmem:[%s338_s18 + $0x10] sm:$0xff] %v1552_v48 }
 0x363   : > { %1557 = vst [vmem:[%s338_s18 + $0x18] sm:$0xff] %v1553_v10 }
 0x364   : > { %1932 = shalt.err (!%p1929_p7)
}
 0x365   : > { %s1933_s19 = scalar_lea.hbm %s3226_s16, 512  ;;  %s1937_s18 = scalar_lea.hbm %s3279_s8, 1024 }
 0x366   : > { %p1934_p9 = scmp.ne.s32.totalorder %s3226_s16, %s1933_s19  ;;  %p1938_p5 = scmp.lt.u32.totalorder %s3226_s16, %s3279_s8 }
 0x367   : > { %p1939_p11 = scmp.lt.u32.totalorder %s1937_s18, %s1933_s19  ;;  %p1941_p4 = scmp.lt.u32.totalorder %s1933_s19, %s3226_s16 }
 0x368   : > { %p1935_p1 = pnand %p1934_p9, %p2203_p12 }
 0x369   : > { %p1940_p2 = por %p1939_p11, %p1938_p5 }
 0x36a   : > { %p1936_p0 = pneg %p1935_p1 }
 0x36b   : > { %p1942_p6 = por %p1941_p4, %p1940_p2 }
 0x36d   : > { %p1943_p8 = pnand %p1942_p6, %p1936_p0 }
 0x36f   : > { %1946 = shalt.err (!%p1943_p8)
}
 0x370   : > { %s2063_s25 = smov 256   ;;  %s3442_s9 = smov 16  }
 0x371   : > { %1694 = dma.vmem_to_hbm [thread:$0]  (%p2203_p12), %s3219_s11, 512, %s3226_s16, %s1559_s22, %s2063_s25, %s2063_s25, %s3442_s9  }
 0x372 PF: > { %s1587_s17 = sand.u32 1, %s1977_s27   ;;  %p3443_p10 = scmp.ne.s32.totalorder %s3330_s12, 0 }
 0x373   : > { %p3444_p13 = scmp.ge.s32.totalorder %s1989_s30, 2  ;;  %s1588_s10 = scalar_lea.sflag [#allocation4], %s1587_s17 }
 0x375   : > { %p1705_p3 = pnand %p3444_p13, %p3443_p10 }
 0x377   : > { %1972 = dma.done.wait (!%p1705_p3), %s1588_s10, 512  }
 0x378   : > { %1974 = vsyncadd (!%p1705_p3), %s1588_s10, 4294966784  ;;  %s3445_s30 = sld [smem:[#allocation11_spill]]  ;;  %s3446_s27 = smov %s1981_s28 }
 0x379   : > { %s3447_s28 = smov %s1985_s29  ;;  %s3448_s29 = smov %s2199_s23 }
 0x37e   : > { %p22_p7 = scmp.ge.s32.totalorder %s3445_s30, 4  }
 0x380   :  { %24 = sbr.rel (!%p22_p7) target bundleno = 6 (0x6), region = 132 }
 0x387   :  { %1593 = vsyncpa [#allocation3], 1 }
 0x388   :  { %1595 = vsyncpa [#allocation3 + $0x1], 1 }
 0x389   :  { %1596 = vsyncpa [#allocation6], 1 }
 0x38a   :  { %1597 = vsyncpa [#allocation4], 1 }
 0x38b   :  { %1599 = vsyncpa [#allocation4 + $0x1], 1 }

</bundles_post_ra>
